<compile_context>
chip_gen: v6e
topology: v6e:2x2x1
jax: 0.10.0
libtpu: 0.0.40
codegen_flags: <defaults>
</compile_context>

<pallas_src>
import functools

import numpy as np
import jax
import jax.numpy as jnp
from jax import lax
from jax.experimental import pallas as pl
from jax.experimental.pallas import tpu as pltpu


def _round_up(n, m):
    return ((n + m - 1) // m) * m


def hybrid_kernel(xcol_ref, const_ref, out_ref, g_scr, *,
                  B_TILE, T_IN, T_OUT, KC, C_CONV, H, M_HID, NFREQ, NCLS, OFF):
    f32 = jnp.float32
    bf16 = jnp.bfloat16
    N1 = NFREQ + 1
    NF = NFREQ * N1

    def cst(name, rows, cols):
        r = OFF[name]
        return const_ref[r:r + rows, 0:cols]          # static view into the packed slab

    # ---- Conv1d ("same" padding via im2col) + ReLU: (Bt*T_IN, K*C_IN) @ (K*C_IN, 32) ----
    wconv = cst('wconv', KC, C_CONV).astype(bf16)
    bconv = cst('bconv', 1, C_CONV)
    conv = jnp.dot(xcol_ref[...], wconv, preferred_element_type=f32) + bconv
    conv = jnp.maximum(conv, 0.0)                                    # (Bt*T_IN, 32) f32

    # ---- SpectralPooling along time: shared (T_OUT, T_IN) map, batched matmul ----------
    poolT = cst('pool', B_TILE * T_OUT, T_IN).astype(bf16).reshape(B_TILE, T_OUT, T_IN)
    conv3 = conv.astype(bf16).reshape(B_TILE, T_IN, C_CONV)
    seq3 = jnp.einsum('bot,btc->boc', poolT, conv3,
                      preferred_element_type=f32)                    # (Bt, T_OUT, 32)

    # ---- hoisted BiLSTM input projection (fwd | bwd gates), rows = b*T_OUT + t ---------
    wih = cst('wih', C_CONV, 8 * H).astype(bf16)
    bih = cst('bih', 1, 8 * H)
    seq2 = seq3.reshape(B_TILE * T_OUT, C_CONV).astype(bf16)
    g_scr[...] = jnp.dot(seq2, wih, preferred_element_type=f32) + bih

    def gate_rows(t, lo, hi):
        # gather the per-batch gate rows for timestep t from the batch-major gate scratch
        return jnp.concatenate(
            [g_scr[pl.ds(b * T_OUT + t, 1), lo:hi] for b in range(B_TILE)], axis=0)

    whh = cst('whh', H, 4 * H)                                       # forward recurrence weight

    def lstm_step(t, h, c):
        g = gate_rows(t, 0, 4 * H) + jnp.dot(h, whh, preferred_element_type=f32)
        i = jax.nn.sigmoid(g[:, 0 * H:1 * H])
        f = jax.nn.sigmoid(g[:, 1 * H:2 * H])
        gg = jnp.tanh(g[:, 2 * H:3 * H])
        o = jax.nn.sigmoid(g[:, 3 * H:4 * H])
        c = f * c + i * gg
        h = o * jnp.tanh(c)
        return h, c

    h = jnp.zeros((B_TILE, H), f32)
    c = jnp.zeros((B_TILE, H), f32)
    if T_OUT <= 16:
        # small T_OUT: full static unroll, all gate reads are static slices
        for t in range(T_OUT):
            h, c = lstm_step(t, h, c)
    else:
        # large T_OUT: bounded live ranges, dynamic pl.ds row reads from the scratch
        h, c = lax.fori_loop(0, T_OUT, lambda t, hc: lstm_step(t, *hc), (h, c))
    h_fwd = h

    # ---- backward direction at lstm_out[:, -1, :]: first reverse step, zero init state -
    gb = gate_rows(T_OUT - 1, 4 * H, 8 * H)
    ib = jax.nn.sigmoid(gb[:, 0 * H:1 * H])
    ggb = jnp.tanh(gb[:, 2 * H:3 * H])
    ob = jax.nn.sigmoid(gb[:, 3 * H:4 * H])
    h_bwd = ob * jnp.tanh(ib * ggb)

    # ---- mlp1 (Linear(2H -> M_HID) + ReLU), single fused dot ---------------------------
    hcat = jnp.concatenate([h_fwd, h_bwd], axis=-1)                  # (Bt, 2H)
    w1 = cst('w1', 2 * H, M_HID)
    b1 = cst('b1', 1, M_HID)
    hid = jnp.maximum(jnp.dot(hcat, w1, preferred_element_type=f32) + b1, 0.0)

    # ---- Fourier head: one fused linear emits shifted/tiled coefficient copies ---------
    wf4 = cst('wf4', M_HID, 4 * NF)
    bf4 = cst('bf4', 1, 4 * NF)
    af = jnp.dot(hid, wf4, preferred_element_type=f32) + bf4         # (Bt, 4*NF)
    a_sh_re = af[:, 0 * NF:1 * NF]
    a_sh_im = af[:, 1 * NF:2 * NF]
    a_tl_re = af[:, 2 * NF:3 * NF]
    a_tl_im = af[:, 3 * NF:4 * NF]

    # lag-0 autocorrelation (tl blocks are NFREQ copies of the raw coefficients)
    c0 = jnp.sum(a_tl_re * a_tl_re + a_tl_im * a_tl_im,
                 axis=-1, keepdims=True) * (1.0 / NFREQ)             # (Bt, 1)

    prod_re = a_sh_re * a_tl_re + a_sh_im * a_tl_im                  # Re(a_{j+k} conj(a_j))
    prod_im = a_sh_im * a_tl_re - a_sh_re * a_tl_im                  # Im(a_{j+k} conj(a_j))
    prods = jnp.concatenate([prod_re, prod_im], axis=-1)             # (Bt, 2*NF)

    rcs = cst('rcs', 2 * NF, NCLS)                                   # stacked [RC ; -RS]
    num = jnp.dot(prods, rcs, preferred_element_type=f32)            # (Bt, NCLS)

    inv_c0 = pl.reciprocal(c0 + 1e-8, approx=False)                  # exact -> no NaN surprises
    pdf = jnp.maximum(0.5 + num * inv_c0, 0.0)                       # clamp guards the log
    out_ref[...] = jnp.log(pdf + 1e-5)


def make_params(key, *, c_in, k, c_conv, h, m_hid, nfreq, ncls):
    keys = jax.random.split(key, 16)
    u = lambda kk, shape, bound: jax.random.uniform(kk, shape, jnp.float32, -bound, bound)

    # Conv1d(c_in -> 32, kernel k)
    cb = 1.0 / np.sqrt(c_in * k)
    w_conv = u(keys[0], (c_conv, c_in, k), cb)
    b_conv = u(keys[1], (c_conv,), cb)

    # LSTM (bidirectional, input 32, hidden h)
    lb = 1.0 / np.sqrt(h)
    w_ih_f = u(keys[2], (4 * h, c_conv), lb)
    w_hh_f = u(keys[3], (4 * h, h), lb)
    b_lstm_f = u(keys[4], (4 * h,), lb) + u(keys[5], (4 * h,), lb)   # b_ih + b_hh
    w_ih_b = u(keys[6], (4 * h, c_conv), lb)
    w_hh_b = u(keys[7], (4 * h, h), lb)
    b_lstm_b = u(keys[8], (4 * h,), lb) + u(keys[9], (4 * h,), lb)

    # mlp1: Linear(2h -> m_hid)
    mb = 1.0 / np.sqrt(2 * h)
    w1 = u(keys[10], (m_hid, 2 * h), mb)
    b1 = u(keys[11], (m_hid,), mb)

    # Fourier head linear: Linear(m_hid -> 2*(nfreq+1)), weights scaled /100
    fb = 1.0 / np.sqrt(m_hid)
    wf = u(keys[12], (2 * (nfreq + 1), m_hid), fb) / 100.0
    bf = u(keys[13], (2 * (nfreq + 1),), fb) / 100.0

    return dict(w_conv=w_conv, b_conv=b_conv,
                w_ih_f=w_ih_f, w_hh_f=w_hh_f, b_lstm_f=b_lstm_f,
                w_ih_b=w_ih_b, w_hh_b=w_hh_b, b_lstm_b=b_lstm_b,
                w1=w1, b1=b1, wf=wf, bf=bf)


def build_hybrid_forward(params, *, batch, t_in, time_size, num_classes,
                         num_frequencies, b_tile=None):
    """One-time host setup: fold & pack constants, return a jitted forward(x)."""
    p = {k: np.asarray(v, np.float64) for k, v in params.items()}
    B, T_IN, T_OUT = batch, t_in, time_size
    NCLS, NFREQ = num_classes, num_frequencies
    C_CONV, C_IN, K = p['w_conv'].shape
    H = p['w_hh_f'].shape[1]
    M_HID = p['w1'].shape[0]
    N1 = NFREQ + 1
    NF = NFREQ * N1
    KC = K * C_IN
    pad = (K - 1) // 2

    B_TILE = b_tile if b_tile is not None else (B if B <= 8 else 8)
    assert B % B_TILE == 0, "batch must be divisible by the batch tile"

    # ---- Conv weights in im2col layout (col index = k*C_IN + ci) ------------------------
    wconv = np.transpose(p['w_conv'], (2, 1, 0)).reshape(KC, C_CONV)
    bconv = p['b_conv'].reshape(1, C_CONV)

    # ---- SpectralPooling as a shared (T_OUT, T_IN) linear map (replicated to B_TILE) ----
    # TODO(synk): some SpectralPooling variants rescale by time_size/T_IN; not applied here.
    keep = min(T_OUT // 2 + 1, T_IN // 2 + 1)
    eye = np.eye(T_IN)
    P = np.fft.irfft(np.fft.rfft(eye, axis=1)[:, :keep], n=T_OUT, axis=1)   # (T_IN, T_OUT)
    poolT = np.tile(P.T, (B_TILE, 1))                                       # (B_TILE*T_OUT, T_IN)

    # ---- BiLSTM: hoisted input projection (fwd | bwd) + forward recurrence weight -------
    wih = np.concatenate([p['w_ih_f'].T, p['w_ih_b'].T], axis=1)            # (32, 8H)
    bih = np.concatenate([p['b_lstm_f'], p['b_lstm_b']]).reshape(1, 8 * H)
    whh = p['w_hh_f'].T                                                      # (H, 4H)
    # w_hh_b unused: lstm_out[:, -1] of the reverse direction is its first step (zero state).

    # ---- mlp1 ----------------------------------------------------------------------------
    w1 = p['w1'].T                                                           # (2H, M_HID)
    b1 = p['b1'].reshape(1, M_HID)

    # ---- Fourier head: fold SHIFT/TILE into the linear, stack cos/-sin class basis -------
    SHIFT = np.zeros((N1, NF))
    TILE = np.zeros((N1, NF))
    edges = np.linspace(-1.0, 1.0, NCLS + 1)
    centers = (edges[:-1] + edges[1:]) / 2.0
    kf = np.arange(1, NFREQ + 1)[:, None]
    cosm = np.cos(np.pi * kf * centers[None, :])                             # (NFREQ, NCLS)
    sinm = np.sin(np.pi * kf * centers[None, :])
    RC = np.zeros((NF, NCLS))
    RS = np.zeros((NF, NCLS))
    for k in range(1, NFREQ + 1):
        for j in range(N1):
            m = (k - 1) * N1 + j
            if j + k < N1:
                SHIFT[j + k, m] = 1.0
            TILE[j, m] = 1.0
            RC[m, :] = cosm[k - 1, :]
            RS[m, :] = sinm[k - 1, :]

    wft = p['wf'].T                                                          # (M_HID, 2*N1)
    bft = p['bf'].reshape(1, 2 * N1)
    wf_re, wf_im = wft[:, :N1], wft[:, N1:]
    bf_re, bf_im = bft[:, :N1], bft[:, N1:]
    wf4 = np.concatenate([wf_re @ SHIFT, wf_im @ SHIFT, wf_re @ TILE, wf_im @ TILE], axis=1)
    bf4 = np.concatenate([bf_re @ SHIFT, bf_im @ SHIFT, bf_re @ TILE, bf_im @ TILE], axis=1)
    rcs = np.concatenate([RC, -RS], axis=0)                                  # (2*NF, NCLS)

    # ---- pack every constant into ONE lane-dense f32 slab (single DMA, static views) ----
    mats = dict(wconv=wconv, bconv=bconv, pool=poolT, wih=wih, bih=bih, whh=whh,
                w1=w1, b1=b1, wf4=wf4, bf4=bf4, rcs=rcs)
    lanes = _round_up(max(m.shape[1] for m in mats.values()), 128)
    OFF, rows = {}, 0
    for name, m in mats.items():
        OFF[name] = rows
        rows += _round_up(m.shape[0], 8)
    slab_np = np.zeros((rows, lanes), np.float32)
    for name, m in mats.items():
        slab_np[OFF[name]:OFF[name] + m.shape[0], :m.shape[1]] = m
    slab = jnp.asarray(slab_np)

    kernel = functools.partial(
        hybrid_kernel, B_TILE=B_TILE, T_IN=T_IN, T_OUT=T_OUT, KC=KC, C_CONV=C_CONV,
        H=H, M_HID=M_HID, NFREQ=NFREQ, NCLS=NCLS, OFF=OFF)

    call = pl.pallas_call(
        kernel,
        out_shape=jax.ShapeDtypeStruct((B, NCLS), jnp.float32),
        grid=(B // B_TILE,),
        in_specs=[
            pl.BlockSpec((B_TILE * T_IN, KC), lambda i: (i, 0)),   # im2col'd input tile (bf16)
            pl.BlockSpec((rows, lanes), lambda i: (0, 0)),         # shared constant slab
        ],
        out_specs=pl.BlockSpec((B_TILE, NCLS), lambda i: (i, 0)),
        scratch_shapes=[pltpu.VMEM((B_TILE * T_OUT, 8 * H), jnp.float32)],  # hoisted x-gates
        compiler_params=pltpu.CompilerParams(
            dimension_semantics=("parallel",),
            vmem_limit_bytes=32 * 1024 * 1024),
    )

    @jax.jit
    def forward(x):
        # x: (B, C_IN, T_IN) float32, PyTorch Conv1d layout.
        # im2col glue fuses into this jit; xcol rows are batch-major (b*T_IN + t).
        # TODO(synk): for long sequences replace im2col (Kx input bytes) with in-kernel
        # shifted reads of the padded input.
        x_btc = jnp.transpose(x, (0, 2, 1)).astype(jnp.float32)
        xpad = jnp.pad(x_btc, ((0, 0), (pad, pad), (0, 0)))
        xcol = jnp.concatenate([xpad[:, k:k + T_IN, :] for k in range(K)], axis=-1)
        xcol = xcol.reshape(B * T_IN, KC).astype(jnp.bfloat16)
        return call(xcol, slab)

    return forward


if __name__ == "__main__":
    # small shapes consistent with the module's forward pass
    B = 2
    C_IN = 3          # input_channels
    T_IN = 16         # input sequence length
    K = 7             # conv_kernel_size
    C_CONV = 32       # conv out channels (hard-coded in the module)
    TIME_SIZE = 8     # spectral-pooling output length
    H = 16            # lstm_hidden_size
    M_HID = 32        # mlp_hidden_size
    NFREQ = 4         # num_frequencies
    NCLS = 2          # num_classes

    root = jax.random.PRNGKey(0)
    kx, kp = jax.random.split(root)
    x = jax.random.normal(kx, (B, C_IN, T_IN), dtype=jnp.float32)
    params = make_params(kp, c_in=C_IN, k=K, c_conv=C_CONV, h=H,
                         m_hid=M_HID, nfreq=NFREQ, ncls=NCLS)

    forward = build_hybrid_forward(params, batch=B, t_in=T_IN, time_size=TIME_SIZE,
                                   num_classes=NCLS, num_frequencies=NFREQ)
    out = jax.block_until_ready(forward(x))
    assert out.shape == (B, NCLS) and out.dtype == jnp.float32
    assert bool(jnp.all(jnp.isfinite(out)))
    print("KERNEL_OK")
</pallas_src>

<mosaic_0001>
module attributes {stable_mosaic.version = 11 : i64} {
  func.func @hybrid_kernel(%arg0: i32, %arg1: memref<32x21xbf16, #tpu.memory_space<vmem>>, %arg2: memref<224x128xf32, #tpu.memory_space<vmem>>, %arg3: memref<2x2xf32, #tpu.memory_space<vmem>>, %arg4: memref<16x128xf32, #tpu.memory_space<vmem>>) attributes {dimension_semantics = [#tpu.dimension_semantics<parallel>], iteration_bounds = array<i64: 1>, scalar_prefetch = 0 : i64, scratch_operands = 1 : i64, tpu.core_type = #tpu.core_type<tc>, window_params = [{transform_indices = @transform_0, window_bounds = array<i64: 32, 21>}, {pipeline_mode = #tpu.pipeline_mode<synchronous>, transform_indices = @transform_1, window_bounds = array<i64: 224, 128>}, {transform_indices = @transform_2, window_bounds = array<i64: 2, 2>}]} {
    %c0 = arith.constant 0 : index
    %c0_0 = arith.constant 0 : index
    %0 = vector.load %arg2[%c0, %c0_0] : memref<224x128xf32, #tpu.memory_space<vmem>>, vector<21x32xf32>
    %1 = arith.truncf %0 : vector<21x32xf32> to vector<21x32xbf16>
    %c24 = arith.constant 24 : index
    %c0_1 = arith.constant 0 : index
    %2 = vector.load %arg2[%c24, %c0_1] : memref<224x128xf32, #tpu.memory_space<vmem>>, vector<1x32xf32>
    %c0_2 = arith.constant 0 : index
    %c0_3 = arith.constant 0 : index
    %3 = vector.load %arg1[%c0_2, %c0_3] : memref<32x21xbf16, #tpu.memory_space<vmem>>, vector<32x21xbf16>
    %cst = arith.constant dense<0.000000e+00> : vector<32x32xf32>
    %4 = tpu.matmul %3, %1, %cst {dimension_numbers = #tpu.dot_dimension_numbers<[1], [0], [0], [1], [0, 0, 1, 1], [], []>} : vector<32x21xbf16>, vector<21x32xbf16>, vector<32x32xf32> -> vector<32x32xf32>
    %5 = vector.broadcast %2 : vector<1x32xf32> to vector<32x32xf32>
    %6 = arith.addf %4, %5 : vector<32x32xf32>
    %cst_4 = arith.constant 0.000000e+00 : f32
    %7 = vector.broadcast %cst_4 : f32 to vector<32x32xf32>
    %8 = arith.maximumf %6, %7 : vector<32x32xf32>
    %c32 = arith.constant 32 : index
    %c0_5 = arith.constant 0 : index
    %9 = vector.load %arg2[%c32, %c0_5] : memref<224x128xf32, #tpu.memory_space<vmem>>, vector<16x16xf32>
    %10 = arith.truncf %9 : vector<16x16xf32> to vector<16x16xbf16>
    %11 = vector.shape_cast %10 : vector<16x16xbf16> to vector<2x8x16xbf16>
    %12 = arith.truncf %8 : vector<32x32xf32> to vector<32x32xbf16>
    %13 = vector.shape_cast %12 : vector<32x32xbf16> to vector<2x16x32xbf16>
    "tpu.trace_start"() <{level = 10 : i32, message = "bot,btc->boc"}> : () -> ()
    %cst_6 = arith.constant dense<0.000000e+00> : vector<2x8x32xf32>
    %14 = tpu.matmul %11, %13, %cst_6 {dimension_numbers = #tpu.dot_dimension_numbers<[2], [1], [1], [2], [0, 0, 0, 1, 1, 2], [0], [0]>} : vector<2x8x16xbf16>, vector<2x16x32xbf16>, vector<2x8x32xf32> -> vector<2x8x32xf32>
    "tpu.trace_stop"() : () -> ()
    %c48 = arith.constant 48 : index
    %c0_7 = arith.constant 0 : index
    %15 = vector.load %arg2[%c48, %c0_7] : memref<224x128xf32, #tpu.memory_space<vmem>>, vector<32x128xf32>
    %16 = arith.truncf %15 : vector<32x128xf32> to vector<32x128xbf16>
    %c80 = arith.constant 80 : index
    %c0_8 = arith.constant 0 : index
    %17 = vector.load %arg2[%c80, %c0_8] : memref<224x128xf32, #tpu.memory_space<vmem>>, vector<1x128xf32>
    %18 = vector.shape_cast %14 : vector<2x8x32xf32> to vector<16x32xf32>
    %19 = arith.truncf %18 : vector<16x32xf32> to vector<16x32xbf16>
    %cst_9 = arith.constant dense<0.000000e+00> : vector<16x128xf32>
    %20 = tpu.matmul %19, %16, %cst_9 {dimension_numbers = #tpu.dot_dimension_numbers<[1], [0], [0], [1], [0, 0, 1, 1], [], []>} : vector<16x32xbf16>, vector<32x128xbf16>, vector<16x128xf32> -> vector<16x128xf32>
    %21 = vector.broadcast %17 : vector<1x128xf32> to vector<16x128xf32>
    %22 = arith.addf %20, %21 : vector<16x128xf32>
    %c0_10 = arith.constant 0 : index
    %c0_11 = arith.constant 0 : index
    %23 = vector.load %arg4[%c0_10, %c0_11] : memref<16x128xf32, #tpu.memory_space<vmem>>, vector<16x128xf32>
    tpu.vector_store %arg4[%c0_10, %c0_11], %22 {strides = array<i32>} : memref<16x128xf32, #tpu.memory_space<vmem>>, vector<16x128xf32>,
    %c88 = arith.constant 88 : index
    %c0_12 = arith.constant 0 : index
    %24 = vector.load %arg2[%c88, %c0_12] : memref<224x128xf32, #tpu.memory_space<vmem>>, vector<16x64xf32>
    %cst_13 = arith.constant 0.000000e+00 : f32
    %25 = vector.broadcast %cst_13 : f32 to vector<2x16xf32>
    %cst_14 = arith.constant 0.000000e+00 : f32
    %26 = vector.broadcast %cst_14 : f32 to vector<2x16xf32>
    %c0_15 = arith.constant 0 : index
    %c0_16 = arith.constant 0 : index
    %27 = vector.load %arg4[%c0_15, %c0_16] : memref<16x128xf32, #tpu.memory_space<vmem>>, vector<1x64xf32>
    %c8 = arith.constant 8 : index
    %c0_17 = arith.constant 0 : index
    %28 = vector.load %arg4[%c8, %c0_17] : memref<16x128xf32, #tpu.memory_space<vmem>>, vector<1x64xf32>
    %29 = tpu.concatenate %27, %28 in 0 : vector<1x64xf32>, vector<1x64xf32> -> vector<2x64xf32>
    %cst_18 = arith.constant dense<0.000000e+00> : vector<2x64xf32>
    %30 = tpu.matmul %25, %24, %cst_18 {dimension_numbers = #tpu.dot_dimension_numbers<[1], [0], [0], [1], [0, 0, 1, 1], [], []>} : vector<2x16xf32>, vector<16x64xf32>, vector<2x64xf32> -> vector<2x64xf32>
    %31 = arith.addf %29, %30 : vector<2x64xf32>
    %32 = vector.extract_strided_slice %31 {offsets = [0, 0], sizes = [2, 16], strides = [1, 1]} : vector<2x64xf32> to vector<2x16xf32>
    %33 = arith.negf %32 : vector<2x16xf32>
    %34 = math.exp %33 : vector<2x16xf32>
    %cst_19 = arith.constant 1.000000e+00 : f32
    %35 = vector.broadcast %cst_19 : f32 to vector<2x16xf32>
    %36 = arith.addf %35, %34 : vector<2x16xf32>
    %37 = arith.divf %35, %36 : vector<2x16xf32>
    %38 = vector.extract_strided_slice %31 {offsets = [0, 16], sizes = [2, 16], strides = [1, 1]} : vector<2x64xf32> to vector<2x16xf32>
    %39 = arith.negf %38 : vector<2x16xf32>
    %40 = math.exp %39 : vector<2x16xf32>
    %cst_20 = arith.constant 1.000000e+00 : f32
    %41 = vector.broadcast %cst_20 : f32 to vector<2x16xf32>
    %42 = arith.addf %41, %40 : vector<2x16xf32>
    %43 = arith.divf %41, %42 : vector<2x16xf32>
    %44 = vector.extract_strided_slice %31 {offsets = [0, 32], sizes = [2, 16], strides = [1, 1]} : vector<2x64xf32> to vector<2x16xf32>
    %45 = math.tanh %44 : vector<2x16xf32>
    %46 = vector.extract_strided_slice %31 {offsets = [0, 48], sizes = [2, 16], strides = [1, 1]} : vector<2x64xf32> to vector<2x16xf32>
    %47 = arith.negf %46 : vector<2x16xf32>
    %48 = math.exp %47 : vector<2x16xf32>
    %cst_21 = arith.constant 1.000000e+00 : f32
    %49 = vector.broadcast %cst_21 : f32 to vector<2x16xf32>
    %50 = arith.addf %49, %48 : vector<2x16xf32>
    %51 = arith.divf %49, %50 : vector<2x16xf32>
    %52 = arith.mulf %43, %26 : vector<2x16xf32>
    %53 = arith.mulf %37, %45 : vector<2x16xf32>
    %54 = arith.addf %52, %53 : vector<2x16xf32>
    %55 = math.tanh %54 : vector<2x16xf32>
    %56 = arith.mulf %51, %55 : vector<2x16xf32>
    %c1 = arith.constant 1 : index
    %c0_22 = arith.constant 0 : index
    %57 = vector.load %arg4[%c1, %c0_22] : memref<16x128xf32, #tpu.memory_space<vmem>>, vector<1x64xf32>
    %c9 = arith.constant 9 : index
    %c0_23 = arith.constant 0 : index
    %58 = vector.load %arg4[%c9, %c0_23] : memref<16x128xf32, #tpu.memory_space<vmem>>, vector<1x64xf32>
    %59 = tpu.concatenate %57, %58 in 0 : vector<1x64xf32>, vector<1x64xf32> -> vector<2x64xf32>
    %cst_24 = arith.constant dense<0.000000e+00> : vector<2x64xf32>
    %60 = tpu.matmul %56, %24, %cst_24 {dimension_numbers = #tpu.dot_dimension_numbers<[1], [0], [0], [1], [0, 0, 1, 1], [], []>} : vector<2x16xf32>, vector<16x64xf32>, vector<2x64xf32> -> vector<2x64xf32>
    %61 = arith.addf %59, %60 : vector<2x64xf32>
    %62 = vector.extract_strided_slice %61 {offsets = [0, 0], sizes = [2, 16], strides = [1, 1]} : vector<2x64xf32> to vector<2x16xf32>
    %63 = arith.negf %62 : vector<2x16xf32>
    %64 = math.exp %63 : vector<2x16xf32>
    %cst_25 = arith.constant 1.000000e+00 : f32
    %65 = vector.broadcast %cst_25 : f32 to vector<2x16xf32>
    %66 = arith.addf %65, %64 : vector<2x16xf32>
    %67 = arith.divf %65, %66 : vector<2x16xf32>
    %68 = vector.extract_strided_slice %61 {offsets = [0, 16], sizes = [2, 16], strides = [1, 1]} : vector<2x64xf32> to vector<2x16xf32>
    %69 = arith.negf %68 : vector<2x16xf32>
    %70 = math.exp %69 : vector<2x16xf32>
    %cst_26 = arith.constant 1.000000e+00 : f32
    %71 = vector.broadcast %cst_26 : f32 to vector<2x16xf32>
    %72 = arith.addf %71, %70 : vector<2x16xf32>
    %73 = arith.divf %71, %72 : vector<2x16xf32>
    %74 = vector.extract_strided_slice %61 {offsets = [0, 32], sizes = [2, 16], strides = [1, 1]} : vector<2x64xf32> to vector<2x16xf32>
    %75 = math.tanh %74 : vector<2x16xf32>
    %76 = vector.extract_strided_slice %61 {offsets = [0, 48], sizes = [2, 16], strides = [1, 1]} : vector<2x64xf32> to vector<2x16xf32>
    %77 = arith.negf %76 : vector<2x16xf32>
    %78 = math.exp %77 : vector<2x16xf32>
    %cst_27 = arith.constant 1.000000e+00 : f32
    %79 = vector.broadcast %cst_27 : f32 to vector<2x16xf32>
    %80 = arith.addf %79, %78 : vector<2x16xf32>
    %81 = arith.divf %79, %80 : vector<2x16xf32>
    %82 = arith.mulf %73, %54 : vector<2x16xf32>
    %83 = arith.mulf %67, %75 : vector<2x16xf32>
    %84 = arith.addf %82, %83 : vector<2x16xf32>
    %85 = math.tanh %84 : vector<2x16xf32>
    %86 = arith.mulf %81, %85 : vector<2x16xf32>
    %c2 = arith.constant 2 : index
    %c0_28 = arith.constant 0 : index
    %87 = vector.load %arg4[%c2, %c0_28] : memref<16x128xf32, #tpu.memory_space<vmem>>, vector<1x64xf32>
    %c10 = arith.constant 10 : index
    %c0_29 = arith.constant 0 : index
    %88 = vector.load %arg4[%c10, %c0_29] : memref<16x128xf32, #tpu.memory_space<vmem>>, vector<1x64xf32>
    %89 = tpu.concatenate %87, %88 in 0 : vector<1x64xf32>, vector<1x64xf32> -> vector<2x64xf32>
    %cst_30 = arith.constant dense<0.000000e+00> : vector<2x64xf32>
    %90 = tpu.matmul %86, %24, %cst_30 {dimension_numbers = #tpu.dot_dimension_numbers<[1], [0], [0], [1], [0, 0, 1, 1], [], []>} : vector<2x16xf32>, vector<16x64xf32>, vector<2x64xf32> -> vector<2x64xf32>
    %91 = arith.addf %89, %90 : vector<2x64xf32>
    %92 = vector.extract_strided_slice %91 {offsets = [0, 0], sizes = [2, 16], strides = [1, 1]} : vector<2x64xf32> to vector<2x16xf32>
    %93 = arith.negf %92 : vector<2x16xf32>
    %94 = math.exp %93 : vector<2x16xf32>
    %cst_31 = arith.constant 1.000000e+00 : f32
    %95 = vector.broadcast %cst_31 : f32 to vector<2x16xf32>
    %96 = arith.addf %95, %94 : vector<2x16xf32>
    %97 = arith.divf %95, %96 : vector<2x16xf32>
    %98 = vector.extract_strided_slice %91 {offsets = [0, 16], sizes = [2, 16], strides = [1, 1]} : vector<2x64xf32> to vector<2x16xf32>
    %99 = arith.negf %98 : vector<2x16xf32>
    %100 = math.exp %99 : vector<2x16xf32>
    %cst_32 = arith.constant 1.000000e+00 : f32
    %101 = vector.broadcast %cst_32 : f32 to vector<2x16xf32>
    %102 = arith.addf %101, %100 : vector<2x16xf32>
    %103 = arith.divf %101, %102 : vector<2x16xf32>
    %104 = vector.extract_strided_slice %91 {offsets = [0, 32], sizes = [2, 16], strides = [1, 1]} : vector<2x64xf32> to vector<2x16xf32>
    %105 = math.tanh %104 : vector<2x16xf32>
    %106 = vector.extract_strided_slice %91 {offsets = [0, 48], sizes = [2, 16], strides = [1, 1]} : vector<2x64xf32> to vector<2x16xf32>
    %107 = arith.negf %106 : vector<2x16xf32>
    %108 = math.exp %107 : vector<2x16xf32>
    %cst_33 = arith.constant 1.000000e+00 : f32
    %109 = vector.broadcast %cst_33 : f32 to vector<2x16xf32>
    %110 = arith.addf %109, %108 : vector<2x16xf32>
    %111 = arith.divf %109, %110 : vector<2x16xf32>
    %112 = arith.mulf %103, %84 : vector<2x16xf32>
    %113 = arith.mulf %97, %105 : vector<2x16xf32>
    %114 = arith.addf %112, %113 : vector<2x16xf32>
    %115 = math.tanh %114 : vector<2x16xf32>
    %116 = arith.mulf %111, %115 : vector<2x16xf32>
    %c3 = arith.constant 3 : index
    %c0_34 = arith.constant 0 : index
    %117 = vector.load %arg4[%c3, %c0_34] : memref<16x128xf32, #tpu.memory_space<vmem>>, vector<1x64xf32>
    %c11 = arith.constant 11 : index
    %c0_35 = arith.constant 0 : index
    %118 = vector.load %arg4[%c11, %c0_35] : memref<16x128xf32, #tpu.memory_space<vmem>>, vector<1x64xf32>
    %119 = tpu.concatenate %117, %118 in 0 : vector<1x64xf32>, vector<1x64xf32> -> vector<2x64xf32>
    %cst_36 = arith.constant dense<0.000000e+00> : vector<2x64xf32>
    %120 = tpu.matmul %116, %24, %cst_36 {dimension_numbers = #tpu.dot_dimension_numbers<[1], [0], [0], [1], [0, 0, 1, 1], [], []>} : vector<2x16xf32>, vector<16x64xf32>, vector<2x64xf32> -> vector<2x64xf32>
    %121 = arith.addf %119, %120 : vector<2x64xf32>
    %122 = vector.extract_strided_slice %121 {offsets = [0, 0], sizes = [2, 16], strides = [1, 1]} : vector<2x64xf32> to vector<2x16xf32>
    %123 = arith.negf %122 : vector<2x16xf32>
    %124 = math.exp %123 : vector<2x16xf32>
    %cst_37 = arith.constant 1.000000e+00 : f32
    %125 = vector.broadcast %cst_37 : f32 to vector<2x16xf32>
    %126 = arith.addf %125, %124 : vector<2x16xf32>
    %127 = arith.divf %125, %126 : vector<2x16xf32>
    %128 = vector.extract_strided_slice %121 {offsets = [0, 16], sizes = [2, 16], strides = [1, 1]} : vector<2x64xf32> to vector<2x16xf32>
    %129 = arith.negf %128 : vector<2x16xf32>
    %130 = math.exp %129 : vector<2x16xf32>
    %cst_38 = arith.constant 1.000000e+00 : f32
    %131 = vector.broadcast %cst_38 : f32 to vector<2x16xf32>
    %132 = arith.addf %131, %130 : vector<2x16xf32>
    %133 = arith.divf %131, %132 : vector<2x16xf32>
    %134 = vector.extract_strided_slice %121 {offsets = [0, 32], sizes = [2, 16], strides = [1, 1]} : vector<2x64xf32> to vector<2x16xf32>
    %135 = math.tanh %134 : vector<2x16xf32>
    %136 = vector.extract_strided_slice %121 {offsets = [0, 48], sizes = [2, 16], strides = [1, 1]} : vector<2x64xf32> to vector<2x16xf32>
    %137 = arith.negf %136 : vector<2x16xf32>
    %138 = math.exp %137 : vector<2x16xf32>
    %cst_39 = arith.constant 1.000000e+00 : f32
    %139 = vector.broadcast %cst_39 : f32 to vector<2x16xf32>
    %140 = arith.addf %139, %138 : vector<2x16xf32>
    %141 = arith.divf %139, %140 : vector<2x16xf32>
    %142 = arith.mulf %133, %114 : vector<2x16xf32>
    %143 = arith.mulf %127, %135 : vector<2x16xf32>
    %144 = arith.addf %142, %143 : vector<2x16xf32>
    %145 = math.tanh %144 : vector<2x16xf32>
    %146 = arith.mulf %141, %145 : vector<2x16xf32>
    %c4 = arith.constant 4 : index
    %c0_40 = arith.constant 0 : index
    %147 = vector.load %arg4[%c4, %c0_40] : memref<16x128xf32, #tpu.memory_space<vmem>>, vector<1x64xf32>
    %c12 = arith.constant 12 : index
    %c0_41 = arith.constant 0 : index
    %148 = vector.load %arg4[%c12, %c0_41] : memref<16x128xf32, #tpu.memory_space<vmem>>, vector<1x64xf32>
    %149 = tpu.concatenate %147, %148 in 0 : vector<1x64xf32>, vector<1x64xf32> -> vector<2x64xf32>
    %cst_42 = arith.constant dense<0.000000e+00> : vector<2x64xf32>
    %150 = tpu.matmul %146, %24, %cst_42 {dimension_numbers = #tpu.dot_dimension_numbers<[1], [0], [0], [1], [0, 0, 1, 1], [], []>} : vector<2x16xf32>, vector<16x64xf32>, vector<2x64xf32> -> vector<2x64xf32>
    %151 = arith.addf %149, %150 : vector<2x64xf32>
    %152 = vector.extract_strided_slice %151 {offsets = [0, 0], sizes = [2, 16], strides = [1, 1]} : vector<2x64xf32> to vector<2x16xf32>
    %153 = arith.negf %152 : vector<2x16xf32>
    %154 = math.exp %153 : vector<2x16xf32>
    %cst_43 = arith.constant 1.000000e+00 : f32
    %155 = vector.broadcast %cst_43 : f32 to vector<2x16xf32>
    %156 = arith.addf %155, %154 : vector<2x16xf32>
    %157 = arith.divf %155, %156 : vector<2x16xf32>
    %158 = vector.extract_strided_slice %151 {offsets = [0, 16], sizes = [2, 16], strides = [1, 1]} : vector<2x64xf32> to vector<2x16xf32>
    %159 = arith.negf %158 : vector<2x16xf32>
    %160 = math.exp %159 : vector<2x16xf32>
    %cst_44 = arith.constant 1.000000e+00 : f32
    %161 = vector.broadcast %cst_44 : f32 to vector<2x16xf32>
    %162 = arith.addf %161, %160 : vector<2x16xf32>
    %163 = arith.divf %161, %162 : vector<2x16xf32>
    %164 = vector.extract_strided_slice %151 {offsets = [0, 32], sizes = [2, 16], strides = [1, 1]} : vector<2x64xf32> to vector<2x16xf32>
    %165 = math.tanh %164 : vector<2x16xf32>
    %166 = vector.extract_strided_slice %151 {offsets = [0, 48], sizes = [2, 16], strides = [1, 1]} : vector<2x64xf32> to vector<2x16xf32>
    %167 = arith.negf %166 : vector<2x16xf32>
    %168 = math.exp %167 : vector<2x16xf32>
    %cst_45 = arith.constant 1.000000e+00 : f32
    %169 = vector.broadcast %cst_45 : f32 to vector<2x16xf32>
    %170 = arith.addf %169, %168 : vector<2x16xf32>
    %171 = arith.divf %169, %170 : vector<2x16xf32>
    %172 = arith.mulf %163, %144 : vector<2x16xf32>
    %173 = arith.mulf %157, %165 : vector<2x16xf32>
    %174 = arith.addf %172, %173 : vector<2x16xf32>
    %175 = math.tanh %174 : vector<2x16xf32>
    %176 = arith.mulf %171, %175 : vector<2x16xf32>
    %c5 = arith.constant 5 : index
    %c0_46 = arith.constant 0 : index
    %177 = vector.load %arg4[%c5, %c0_46] : memref<16x128xf32, #tpu.memory_space<vmem>>, vector<1x64xf32>
    %c13 = arith.constant 13 : index
    %c0_47 = arith.constant 0 : index
    %178 = vector.load %arg4[%c13, %c0_47] : memref<16x128xf32, #tpu.memory_space<vmem>>, vector<1x64xf32>
    %179 = tpu.concatenate %177, %178 in 0 : vector<1x64xf32>, vector<1x64xf32> -> vector<2x64xf32>
    %cst_48 = arith.constant dense<0.000000e+00> : vector<2x64xf32>
    %180 = tpu.matmul %176, %24, %cst_48 {dimension_numbers = #tpu.dot_dimension_numbers<[1], [0], [0], [1], [0, 0, 1, 1], [], []>} : vector<2x16xf32>, vector<16x64xf32>, vector<2x64xf32> -> vector<2x64xf32>
    %181 = arith.addf %179, %180 : vector<2x64xf32>
    %182 = vector.extract_strided_slice %181 {offsets = [0, 0], sizes = [2, 16], strides = [1, 1]} : vector<2x64xf32> to vector<2x16xf32>
    %183 = arith.negf %182 : vector<2x16xf32>
    %184 = math.exp %183 : vector<2x16xf32>
    %cst_49 = arith.constant 1.000000e+00 : f32
    %185 = vector.broadcast %cst_49 : f32 to vector<2x16xf32>
    %186 = arith.addf %185, %184 : vector<2x16xf32>
    %187 = arith.divf %185, %186 : vector<2x16xf32>
    %188 = vector.extract_strided_slice %181 {offsets = [0, 16], sizes = [2, 16], strides = [1, 1]} : vector<2x64xf32> to vector<2x16xf32>
    %189 = arith.negf %188 : vector<2x16xf32>
    %190 = math.exp %189 : vector<2x16xf32>
    %cst_50 = arith.constant 1.000000e+00 : f32
    %191 = vector.broadcast %cst_50 : f32 to vector<2x16xf32>
    %192 = arith.addf %191, %190 : vector<2x16xf32>
    %193 = arith.divf %191, %192 : vector<2x16xf32>
    %194 = vector.extract_strided_slice %181 {offsets = [0, 32], sizes = [2, 16], strides = [1, 1]} : vector<2x64xf32> to vector<2x16xf32>
    %195 = math.tanh %194 : vector<2x16xf32>
    %196 = vector.extract_strided_slice %181 {offsets = [0, 48], sizes = [2, 16], strides = [1, 1]} : vector<2x64xf32> to vector<2x16xf32>
    %197 = arith.negf %196 : vector<2x16xf32>
    %198 = math.exp %197 : vector<2x16xf32>
    %cst_51 = arith.constant 1.000000e+00 : f32
    %199 = vector.broadcast %cst_51 : f32 to vector<2x16xf32>
    %200 = arith.addf %199, %198 : vector<2x16xf32>
    %201 = arith.divf %199, %200 : vector<2x16xf32>
    %202 = arith.mulf %193, %174 : vector<2x16xf32>
    %203 = arith.mulf %187, %195 : vector<2x16xf32>
    %204 = arith.addf %202, %203 : vector<2x16xf32>
    %205 = math.tanh %204 : vector<2x16xf32>
    %206 = arith.mulf %201, %205 : vector<2x16xf32>
    %c6 = arith.constant 6 : index
    %c0_52 = arith.constant 0 : index
    %207 = vector.load %arg4[%c6, %c0_52] : memref<16x128xf32, #tpu.memory_space<vmem>>, vector<1x64xf32>
    %c14 = arith.constant 14 : index
    %c0_53 = arith.constant 0 : index
    %208 = vector.load %arg4[%c14, %c0_53] : memref<16x128xf32, #tpu.memory_space<vmem>>, vector<1x64xf32>
    %209 = tpu.concatenate %207, %208 in 0 : vector<1x64xf32>, vector<1x64xf32> -> vector<2x64xf32>
    %cst_54 = arith.constant dense<0.000000e+00> : vector<2x64xf32>
    %210 = tpu.matmul %206, %24, %cst_54 {dimension_numbers = #tpu.dot_dimension_numbers<[1], [0], [0], [1], [0, 0, 1, 1], [], []>} : vector<2x16xf32>, vector<16x64xf32>, vector<2x64xf32> -> vector<2x64xf32>
    %211 = arith.addf %209, %210 : vector<2x64xf32>
    %212 = vector.extract_strided_slice %211 {offsets = [0, 0], sizes = [2, 16], strides = [1, 1]} : vector<2x64xf32> to vector<2x16xf32>
    %213 = arith.negf %212 : vector<2x16xf32>
    %214 = math.exp %213 : vector<2x16xf32>
    %cst_55 = arith.constant 1.000000e+00 : f32
    %215 = vector.broadcast %cst_55 : f32 to vector<2x16xf32>
    %216 = arith.addf %215, %214 : vector<2x16xf32>
    %217 = arith.divf %215, %216 : vector<2x16xf32>
    %218 = vector.extract_strided_slice %211 {offsets = [0, 16], sizes = [2, 16], strides = [1, 1]} : vector<2x64xf32> to vector<2x16xf32>
    %219 = arith.negf %218 : vector<2x16xf32>
    %220 = math.exp %219 : vector<2x16xf32>
    %cst_56 = arith.constant 1.000000e+00 : f32
    %221 = vector.broadcast %cst_56 : f32 to vector<2x16xf32>
    %222 = arith.addf %221, %220 : vector<2x16xf32>
    %223 = arith.divf %221, %222 : vector<2x16xf32>
    %224 = vector.extract_strided_slice %211 {offsets = [0, 32], sizes = [2, 16], strides = [1, 1]} : vector<2x64xf32> to vector<2x16xf32>
    %225 = math.tanh %224 : vector<2x16xf32>
    %226 = vector.extract_strided_slice %211 {offsets = [0, 48], sizes = [2, 16], strides = [1, 1]} : vector<2x64xf32> to vector<2x16xf32>
    %227 = arith.negf %226 : vector<2x16xf32>
    %228 = math.exp %227 : vector<2x16xf32>
    %cst_57 = arith.constant 1.000000e+00 : f32
    %229 = vector.broadcast %cst_57 : f32 to vector<2x16xf32>
    %230 = arith.addf %229, %228 : vector<2x16xf32>
    %231 = arith.divf %229, %230 : vector<2x16xf32>
    %232 = arith.mulf %223, %204 : vector<2x16xf32>
    %233 = arith.mulf %217, %225 : vector<2x16xf32>
    %234 = arith.addf %232, %233 : vector<2x16xf32>
    %235 = math.tanh %234 : vector<2x16xf32>
    %236 = arith.mulf %231, %235 : vector<2x16xf32>
    %c7 = arith.constant 7 : index
    %c0_58 = arith.constant 0 : index
    %237 = vector.load %arg4[%c7, %c0_58] : memref<16x128xf32, #tpu.memory_space<vmem>>, vector<1x64xf32>
    %c15 = arith.constant 15 : index
    %c0_59 = arith.constant 0 : index
    %238 = vector.load %arg4[%c15, %c0_59] : memref<16x128xf32, #tpu.memory_space<vmem>>, vector<1x64xf32>
    %239 = tpu.concatenate %237, %238 in 0 : vector<1x64xf32>, vector<1x64xf32> -> vector<2x64xf32>
    %cst_60 = arith.constant dense<0.000000e+00> : vector<2x64xf32>
    %240 = tpu.matmul %236, %24, %cst_60 {dimension_numbers = #tpu.dot_dimension_numbers<[1], [0], [0], [1], [0, 0, 1, 1], [], []>} : vector<2x16xf32>, vector<16x64xf32>, vector<2x64xf32> -> vector<2x64xf32>
    %241 = arith.addf %239, %240 : vector<2x64xf32>
    %242 = vector.extract_strided_slice %241 {offsets = [0, 0], sizes = [2, 16], strides = [1, 1]} : vector<2x64xf32> to vector<2x16xf32>
    %243 = arith.negf %242 : vector<2x16xf32>
    %244 = math.exp %243 : vector<2x16xf32>
    %cst_61 = arith.constant 1.000000e+00 : f32
    %245 = vector.broadcast %cst_61 : f32 to vector<2x16xf32>
    %246 = arith.addf %245, %244 : vector<2x16xf32>
    %247 = arith.divf %245, %246 : vector<2x16xf32>
    %248 = vector.extract_strided_slice %241 {offsets = [0, 16], sizes = [2, 16], strides = [1, 1]} : vector<2x64xf32> to vector<2x16xf32>
    %249 = arith.negf %248 : vector<2x16xf32>
    %250 = math.exp %249 : vector<2x16xf32>
    %cst_62 = arith.constant 1.000000e+00 : f32
    %251 = vector.broadcast %cst_62 : f32 to vector<2x16xf32>
    %252 = arith.addf %251, %250 : vector<2x16xf32>
    %253 = arith.divf %251, %252 : vector<2x16xf32>
    %254 = vector.extract_strided_slice %241 {offsets = [0, 32], sizes = [2, 16], strides = [1, 1]} : vector<2x64xf32> to vector<2x16xf32>
    %255 = math.tanh %254 : vector<2x16xf32>
    %256 = vector.extract_strided_slice %241 {offsets = [0, 48], sizes = [2, 16], strides = [1, 1]} : vector<2x64xf32> to vector<2x16xf32>
    %257 = arith.negf %256 : vector<2x16xf32>
    %258 = math.exp %257 : vector<2x16xf32>
    %cst_63 = arith.constant 1.000000e+00 : f32
    %259 = vector.broadcast %cst_63 : f32 to vector<2x16xf32>
    %260 = arith.addf %259, %258 : vector<2x16xf32>
    %261 = arith.divf %259, %260 : vector<2x16xf32>
    %262 = arith.mulf %253, %234 : vector<2x16xf32>
    %263 = arith.mulf %247, %255 : vector<2x16xf32>
    %264 = arith.addf %262, %263 : vector<2x16xf32>
    %265 = math.tanh %264 : vector<2x16xf32>
    %266 = arith.mulf %261, %265 : vector<2x16xf32>
    %c7_64 = arith.constant 7 : index
    %c64 = arith.constant 64 : index
    %267 = vector.load %arg4[%c7_64, %c64] : memref<16x128xf32, #tpu.memory_space<vmem>>, vector<1x64xf32>
    %c15_65 = arith.constant 15 : index
    %c64_66 = arith.constant 64 : index
    %268 = vector.load %arg4[%c15_65, %c64_66] : memref<16x128xf32, #tpu.memory_space<vmem>>, vector<1x64xf32>
    %269 = tpu.concatenate %267, %268 in 0 : vector<1x64xf32>, vector<1x64xf32> -> vector<2x64xf32>
    %270 = vector.extract_strided_slice %269 {offsets = [0, 0], sizes = [2, 16], strides = [1, 1]} : vector<2x64xf32> to vector<2x16xf32>
    %271 = arith.negf %270 : vector<2x16xf32>
    %272 = math.exp %271 : vector<2x16xf32>
    %cst_67 = arith.constant 1.000000e+00 : f32
    %273 = vector.broadcast %cst_67 : f32 to vector<2x16xf32>
    %274 = arith.addf %273, %272 : vector<2x16xf32>
    %275 = arith.divf %273, %274 : vector<2x16xf32>
    %276 = vector.extract_strided_slice %269 {offsets = [0, 32], sizes = [2, 16], strides = [1, 1]} : vector<2x64xf32> to vector<2x16xf32>
    %277 = math.tanh %276 : vector<2x16xf32>
    %278 = vector.extract_strided_slice %269 {offsets = [0, 48], sizes = [2, 16], strides = [1, 1]} : vector<2x64xf32> to vector<2x16xf32>
    %279 = arith.negf %278 : vector<2x16xf32>
    %280 = math.exp %279 : vector<2x16xf32>
    %cst_68 = arith.constant 1.000000e+00 : f32
    %281 = vector.broadcast %cst_68 : f32 to vector<2x16xf32>
    %282 = arith.addf %281, %280 : vector<2x16xf32>
    %283 = arith.divf %281, %282 : vector<2x16xf32>
    %284 = arith.mulf %275, %277 : vector<2x16xf32>
    %285 = math.tanh %284 : vector<2x16xf32>
    %286 = arith.mulf %283, %285 : vector<2x16xf32>
    %287 = tpu.concatenate %266, %286 in 1 : vector<2x16xf32>, vector<2x16xf32> -> vector<2x32xf32>
    %c104 = arith.constant 104 : index
    %c0_69 = arith.constant 0 : index
    %288 = vector.load %arg2[%c104, %c0_69] : memref<224x128xf32, #tpu.memory_space<vmem>>, vector<32x32xf32>
    %c136 = arith.constant 136 : index
    %c0_70 = arith.constant 0 : index
    %289 = vector.load %arg2[%c136, %c0_70] : memref<224x128xf32, #tpu.memory_space<vmem>>, vector<1x32xf32>
    %cst_71 = arith.constant dense<0.000000e+00> : vector<2x32xf32>
    %290 = tpu.matmul %287, %288, %cst_71 {dimension_numbers = #tpu.dot_dimension_numbers<[1], [0], [0], [1], [0, 0, 1, 1], [], []>} : vector<2x32xf32>, vector<32x32xf32>, vector<2x32xf32> -> vector<2x32xf32>
    %291 = vector.broadcast %289 : vector<1x32xf32> to vector<2x32xf32>
    %292 = arith.addf %290, %291 : vector<2x32xf32>
    %cst_72 = arith.constant 0.000000e+00 : f32
    %293 = vector.broadcast %cst_72 : f32 to vector<2x32xf32>
    %294 = arith.maximumf %292, %293 : vector<2x32xf32>
    %c144 = arith.constant 144 : index
    %c0_73 = arith.constant 0 : index
    %295 = vector.load %arg2[%c144, %c0_73] : memref<224x128xf32, #tpu.memory_space<vmem>>, vector<32x80xf32>
    %c176 = arith.constant 176 : index
    %c0_74 = arith.constant 0 : index
    %296 = vector.load %arg2[%c176, %c0_74] : memref<224x128xf32, #tpu.memory_space<vmem>>, vector<1x80xf32>
    %cst_75 = arith.constant dense<0.000000e+00> : vector<2x80xf32>
    %297 = tpu.matmul %294, %295, %cst_75 {dimension_numbers = #tpu.dot_dimension_numbers<[1], [0], [0], [1], [0, 0, 1, 1], [], []>} : vector<2x32xf32>, vector<32x80xf32>, vector<2x80xf32> -> vector<2x80xf32>
    %298 = vector.broadcast %296 : vector<1x80xf32> to vector<2x80xf32>
    %299 = arith.addf %297, %298 : vector<2x80xf32>
    %300 = vector.extract_strided_slice %299 {offsets = [0, 0], sizes = [2, 20], strides = [1, 1]} : vector<2x80xf32> to vector<2x20xf32>
    %301 = vector.extract_strided_slice %299 {offsets = [0, 20], sizes = [2, 20], strides = [1, 1]} : vector<2x80xf32> to vector<2x20xf32>
    %302 = vector.extract_strided_slice %299 {offsets = [0, 40], sizes = [2, 20], strides = [1, 1]} : vector<2x80xf32> to vector<2x20xf32>
    %303 = vector.extract_strided_slice %299 {offsets = [0, 60], sizes = [2, 20], strides = [1, 1]} : vector<2x80xf32> to vector<2x20xf32>
    %304 = arith.mulf %302, %302 : vector<2x20xf32>
    %305 = arith.mulf %303, %303 : vector<2x20xf32>
    %306 = arith.addf %304, %305 : vector<2x20xf32>
    %cst_76 = arith.constant dense<0.000000e+00> : vector<2xf32>
    %307 = vector.multi_reduction <add>, %306, %cst_76 [1] : vector<2x20xf32> to vector<2xf32>
    %308 = vector.shape_cast %307 : vector<2xf32> to vector<2x1xf32>
    %cst_77 = arith.constant 2.500000e-01 : f32
    %309 = vector.broadcast %cst_77 : f32 to vector<2x1xf32>
    %310 = arith.mulf %308, %309 : vector<2x1xf32>
    %311 = arith.mulf %300, %302 : vector<2x20xf32>
    %312 = arith.mulf %301, %303 : vector<2x20xf32>
    %313 = arith.addf %311, %312 : vector<2x20xf32>
    %314 = arith.mulf %301, %302 : vector<2x20xf32>
    %315 = arith.mulf %300, %303 : vector<2x20xf32>
    %316 = arith.subf %314, %315 : vector<2x20xf32>
    %317 = tpu.concatenate %313, %316 in 1 : vector<2x20xf32>, vector<2x20xf32> -> vector<2x40xf32>
    %c184 = arith.constant 184 : index
    %c0_78 = arith.constant 0 : index
    %318 = vector.load %arg2[%c184, %c0_78] : memref<224x128xf32, #tpu.memory_space<vmem>>, vector<40x2xf32>
    %cst_79 = arith.constant dense<0.000000e+00> : vector<2x2xf32>
    %319 = tpu.matmul %317, %318, %cst_79 {dimension_numbers = #tpu.dot_dimension_numbers<[1], [0], [0], [1], [0, 0, 1, 1], [], []>} : vector<2x40xf32>, vector<40x2xf32>, vector<2x2xf32> -> vector<2x2xf32>
    %cst_80 = arith.constant 9.99999993E-9 : f32
    %320 = vector.broadcast %cst_80 : f32 to vector<2x1xf32>
    %321 = arith.addf %310, %320 : vector<2x1xf32>
    %322 = tpu.reciprocal %321 : vector<2x1xf32> -> vector<2x1xf32>
    %323 = vector.broadcast %322 : vector<2x1xf32> to vector<2x2xf32>
    %324 = arith.mulf %319, %323 : vector<2x2xf32>
    %cst_81 = arith.constant 5.000000e-01 : f32
    %325 = vector.broadcast %cst_81 : f32 to vector<2x2xf32>
    %326 = arith.addf %325, %324 : vector<2x2xf32>
    %cst_82 = arith.constant 0.000000e+00 : f32
    %327 = vector.broadcast %cst_82 : f32 to vector<2x2xf32>
    %328 = arith.maximumf %326, %327 : vector<2x2xf32>
    %cst_83 = arith.constant 9.99999974E-6 : f32
    %329 = vector.broadcast %cst_83 : f32 to vector<2x2xf32>
    %330 = arith.addf %328, %329 : vector<2x2xf32>
    %331 = math.log %330 : vector<2x2xf32>
    %c0_84 = arith.constant 0 : index
    %c0_85 = arith.constant 0 : index
    %332 = vector.load %arg3[%c0_84, %c0_85] : memref<2x2xf32, #tpu.memory_space<vmem>>, vector<2x2xf32>
    tpu.vector_store %arg3[%c0_84, %c0_85], %331 {strides = array<i32>} : memref<2x2xf32, #tpu.memory_space<vmem>>, vector<2x2xf32>,
    return
  }
  func.func @transform_0(%arg0: i32) -> (i32, i32) {
    %c0_i32 = arith.constant 0 : i32
    %c0_i32_0 = arith.constant 0 : i32
    return %arg0, %c0_i32 : i32, i32
  }
  func.func @transform_1(%arg0: i32) -> (i32, i32) {
    %c0_i32 = arith.constant 0 : i32
    %c0_i32_0 = arith.constant 0 : i32
    %c0_i32_1 = arith.constant 0 : i32
    return %c0_i32, %c0_i32_0 : i32, i32
  }
  func.func @transform_2(%arg0: i32) -> (i32, i32) {
    %c0_i32 = arith.constant 0 : i32
    %c0_i32_0 = arith.constant 0 : i32
    return %arg0, %c0_i32 : i32, i32
  }
}

</mosaic_0001>

<bundles_post_ra>
// kernel: forward.1
= control target key start
LH: loop header
LB: loop body
LE: loop exit
PB: predicated region body
PF: predicated region fallthrough
CT: control target
= control target key end

     0   :  { %7 = vsyncpa [#allocation4], 0  ;;  %s1981_s0 = inlined_call_operand.vmem [shape: bf16[32,21], index: 0, kind: input, shape index: {}]   ;;  %s1982_s1 = inlined_call_operand.hbm [shape: f32[224,128], index: 1, kind: input, shape index: {}]   ;;  %s1983_s2 = inlined_call_operand.hbm [shape: f32[2,2], index: 2, kind: output, shape index: {}]  }
   0x1   :  { %8 = vsyncpa [#allocation5], 0  ;;  %s1801_s9 = smov [#allocation3]  }
   0x2   :  { %s16_s10 = sshll.u32 %s1801_s9, 4  ;;  %s17_s10 = int_to_ptr.vmem [resolvable:$true] %s16_s10 }
   0x3   :  { %s1765_s11 = scalar_lea.vmem %s17_s10, 3584  ;;  %p1770_p1 = scmp.lt.s32.totalorder %s17_s10, %s17_s10 }
   0x4   :  { %p1766_p0 = scmp.ne.s32.totalorder %s17_s10, %s1765_s11  ;;  %p1771_p2 = scmp.lt.s32.totalorder %s1765_s11, %s1765_s11 }
   0x6   :  { %p1772_p3 = por %p1771_p2, %p1770_p1 }
   0x8   :  { %p1773_p4 = pnand %p1772_p3, %p1766_p0 }
   0xa   :  { %1776 = shalt.err (!%p1773_p4)
}
   0xb   :  { %s1802_s12 = smov 128   ;;  %s1803_s13 = smov 8  }
   0xc   :  { %22 = dma.hbm_to_vmem [thread:$0]  %s1982_s1, 3584, %s17_s10, [#allocation4], %s1802_s12, %s1802_s12, %s1803_s13  }
   0xd   :  { %1797 = dma.done.wait [#allocation4], 3584  }
   0xe   :  { %1798 = vsyncadd [#allocation4], 4294963712  ;;  %vm58_vm0 = vcmask 1041408   ;;  %vm59_vm1 = vcmask 1042432   ;;  %v1804_v0 = vmov 65535   ;;  %v27_v4 = vld [vmem:[#allocation3] sm:$0xff] }
   0xf   :  { %v60_v1 = vsel %vm58_vm0, 4294967295, %v1804_v0  ;;  %v29_v2 = vld [vmem:[#allocation3 + $0x10] sm:$0x1f]  ;;  %v28_v5 = vld [vmem:[#allocation3 + $0x8] sm:$0xff]  ;;  %vm51_vm2 = vcmask 171008   ;;  %v1680_v10 = vld [vmem:[%s1981_s0 + $0x8] sm:$0xff]  }
  0x10   :  { %v61_v3 = vsel %vm59_vm1, %v60_v1, 0  ;;  %v31_v6 = vpack.c.bf16 %v29_v2, %v29_v2  ;;  %v1679_v7 = vld [vmem:[%s1981_s0] sm:$0xff]   ;;  %v30_v9 = vpack.c.bf16 %v28_v5, %v27_v4  ;;  %v1805_v11 = vmov 0.0   ;;  %v1459_v14 = vld [vmem:[#allocation3 + $0x18] ss:$0 sm:$0xff]  ;;  %v118_v23 = vld [vmem:[#allocation3 + $0x20] sm:$0xff] }
  0x11   :  { %1548 = vmatprep.mubr.msk.bf16.mxu0 %vm51_vm2, %v1679_v7  ;;  %1552 = vmatprep.subr.bf16.mxu1 %v1805_v11  ;;  %vm1806_vm3 = vmmov 0   ;;  %v1491_v26 = vpack.c.bf16 %v118_v23, %v118_v23  ;;  %vm128_vm4 = vcmask 130048   ;;  %v119_v29 = vld [vmem:[#allocation3 + $0x28] sm:$0xff]  ;;  %v217_v31 = vld [vmem:[#allocation3 + $0x40] sm:$0xff]  ;;  %v215_v34 = vld [vmem:[#allocation3 + $0x30] sm:$0xff]  ;;  %vm227_vm5 = vcmask 261120  }
  0x12   :  { %v63_v8 = vand.u32 %v61_v3, %v31_v6  ;;  %1554 = vmatprep.mubr.msk.bf16.mxu1 %vm1806_vm3, %v1805_v11  ;;  %v1492_v30 = vpack.c.bf16 %v119_v29, %v119_v29  ;;  %v218_v32 = vld [vmem:[#allocation3 + $0x48] sm:$0xff]  ;;  %v216_v35 = vld [vmem:[#allocation3 + $0x38] sm:$0xff]  ;;  %v1857_v37 = vld [vmem:[#allocation3 + $0x60] sm:$0xff]  ;;  %vm281_vm6 = vcmask 1040384   ;;  %s1807_s0 = smov 96   ;;  %s1808_s19 = smov 16  }
  0x13   :  { %v220_v33 = vpack.c.bf16 %v218_v32, %v217_v31  ;;  %v219_v36 = vpack.c.bf16 %v216_v35, %v215_v34  ;;  %v1860_v38 = vld [vmem:[#allocation3 + $0x58] sm:$0xff]  ;;  %v1468_v48 = vld [vmem:[#allocation3 + $0x50] ss:$0 sm:$0xff]  ;;  %s1809_s20 = smov 32   ;;  %s1810_s21 = smov 80   ;;  %vm1353_vm7 = vcmask 162816  }
  0x14   :  { %1544 = vmatprep.subr.bf16.mxu0 %v63_v8  ;;  %s1811_s22 = smov 48   ;;  %s1812_s23 = smov 68   ;;  %vm1360_vm8 = vcmask 326656   ;;  %vm1325_vm9 = vcmask 156672   ;;  %vm1442_vm10 = vcmask 9216  }
  0x15   :  { %1545 = vmatpush3.bf16.msra.mxu0 %v63_v8  ;;  %s1813_s24 = smov 88   ;;  %s1814_s25 = smov 108  }
  0x16   :  { %1546 = vmatprep.subr.bf16.mxu0 %v30_v9  ;;  %s1815_s26 = smov 20   ;;  %s1816_s27 = smov [#allocation6]  }
  0x17   :  { %s1450_s28 = sshll.u32 %s1816_s27, 4  ;;  %s1451_s28 = int_to_ptr.vmem [resolvable:$true] %s1450_s28 }
  0x18   :  { %s1777_s29 = scalar_lea.vmem %s1451_s28, 32  ;;  %p1782_p6 = scmp.lt.s32.totalorder %s1451_s28, %s1451_s28 }
  0x19   :  { %1547 = vmatpush3.bf16.msra.mxu0 %v30_v9  ;;  %p1778_p5 = scmp.ne.s32.totalorder %s1451_s28, %s1777_s29  ;;  %p1783_p7 = scmp.lt.s32.totalorder %s1777_s29, %s1777_s29 }
  0x1a   :  { %1564 = vmatprep.subr.bf16.mxu0 %v1805_v11 }
  0x1b   :  { %p1784_p8 = por %p1783_p7, %p1782_p6 }
  0x1c   :  { %1549 = vmatmul.mubr.msk.bf16.vlgmr.msra.gmra.mxu0 %vm51_vm2, %v1680_v10 }
  0x1d   :  { %1568 = vmatprep.mubr.msk.bf16.mxu0 %vm1806_vm3, %v1805_v11  ;;  %1565 = vmatpush3.bf16.msra.mxu0 %v220_v33  ;;  %p1785_p9 = pnand %p1784_p8, %p1778_p5 }
  0x1e   :  { %1566 = vmatprep.subr.bf16.mxu0 %v1805_v11 }
  0x21   :  { %1567 = vmatpush3.bf16.msra.mxu0 %v219_v36 }
  0x22   :  { %1572 = vmatprep.subr.mxu0 %v1805_v11 }
  0xdc   :  { %v1550_v12 = vpop.f32.mrf.mxu0 }
  0xdd   :  { %v108_v20 = vadd.f32 %v1550_v12, %v1459_v14 }
  0xde   :  { %v99_v13 = vpop.f32.mrf.mxu0 }
  0xdf   :  { %v100_v16 = vadd.f32 %v1459_v14, %v99_v13  ;;  %v116_v27 = vmax.f32 %v108_v20, 0.0 }
  0xe0   :  { %v1551_v15 = vpop.f32.mrf.mxu0 }
  0xe1   :  { %v111_v18 = vadd.f32 %v1551_v15, %v1459_v14  ;;  %v114_v21 = vmax.f32 %v100_v16, 0.0 }
  0xe2   :  { %v102_v17 = vpop.f32.mrf.mxu0 }
  0xe3   :  { %v103_v19 = vadd.f32 %v1459_v14, %v102_v17  ;;  %v117_v24 = vmax.f32 %v111_v18, 0.0 }
  0xe5   :  { %v115_v22 = vmax.f32 %v103_v19, 0.0  ;;  %v127_v28 = vpack.c.bf16 %v117_v24, %v116_v27 }
  0xe7   :  { %v126_v25 = vpack.c.bf16 %v115_v22, %v114_v21 }
  0xe9   :  { %1553 = vmatpush3.bf16.msra.mxu1 %v126_v25 }
  0xea   :  { %1558 = vmatprep.subr.bf16.mxu1 %v1805_v11 }
  0xec   :  { %1555 = vmatmul.mubr.msk.bf16.vlgmr.msra.gmra.mxu1 %vm128_vm4, %v1491_v26 }
  0xed   :  { %1559 = vmatpush3.bf16.msra.mxu1 %v127_v28  ;;  %1560 = vmatprep.mubr.msk.bf16.mxu1 %vm1806_vm3, %v1805_v11 }
  0xee   :  { %1586 = vmatprep.subr.mxu1 %v1805_v11 }
  0xf4   :  { %1561 = vmatmul.mubr.msk.bf16.vlgmr.msra.gmra.mxu1 %vm128_vm4, %v1492_v30 }
  0xf5   :  { %1590 = vmatprep.mubr.msk.f32.mxu1 %vm1806_vm3, %v1805_v11  ;;  %1587 = vmatpush3.msra.mxu1 %v1857_v37 }
  0xf6   :  { %1588 = vmatprep.subr.mxu1 %v1805_v11 }
  0xf7   :  { %1589 = vmatpush3.msra.mxu1 %v1860_v38 }
  0xf8   :  { %1600 = vmatprep.subr.mxu1 %v1805_v11 }
 0x1ac   :  { %v166_v39 = vpop.f32.mrf.mxu1 }
 0x1ae   :  { %v1556_v40 = vpop.f32.mrf.mxu1 }
 0x1b0   :  { %v169_v41 = vpop.f32.mrf.mxu1 }
 0x1b2   :  { %v1557_v42 = vpop.f32.mrf.mxu1 }
 0x1b4   :  { %v209_v43 = vpop.f32.mrf.mxu1 }
 0x1b5   :  { %v222_v44 = vpack.c.bf16 %v209_v43, %v166_v39 }
 0x1b6   :  { %v1562_v45 = vpop.f32.mrf.mxu1 }
 0x1b7   :  { %1569 = vmatmul.mubr.msk.bf16.vlgmr.msra.gmra.mxu0 %vm227_vm5, %v222_v44 }
 0x1b8   :  { %v212_v46 = vpop.f32.mrf.mxu1  ;;  %1573 = vmatpush3.msra.mxu0 %v1857_v37  ;;  %1576 = vmatprep.mubr.msk.f32.mxu0 %vm1806_vm3, %v1805_v11 }
 0x1b9   :  { %1574 = vmatprep.subr.mxu0 %v1805_v11 }
 0x1ba   :  { %v1563_v47 = vpop.f32.mrf.mxu1  ;;  %1575 = vmatpush3.msra.mxu0 %v1860_v38 }
 0x1bb   :  { %1579 = vmatprep.subr.mxu0 %v1805_v11 }
 0x1bf   :  { %1577 = vmatmul.mubr.f32.vlgmr.msra.gmra.mxu0 %v1805_v11 }
 0x1c0   :  { %1580 = vmatpush3.msra.mxu0 %v1857_v37  ;;  %1583 = vmatprep.mubr.msk.f32.mxu0 %vm1806_vm3, %v1805_v11 }
 0x1c1   :  { %1581 = vmatprep.subr.mxu0 %v1805_v11 }
 0x1c2   :  { %1582 = vmatpush3.msra.mxu0 %v1860_v38 }
 0x1c3   :  { %1593 = vmatprep.subr.mxu0 %v1805_v11 }
 0x277   :  { %v265_v49 = vpop.f32.mrf.mxu0 }
 0x278   :  { %v266_v50 = vadd.f32 %v1468_v48, %v265_v49 }
 0x279   :  { %v1570_v51 = vpop.f32.mrf.mxu0 }
 0x27a   :  { %272 = vst [vmem:[#allocation2] sm:$0xff] %v266_v50 }
 0x27b   :  { %v268_v52 = vpop.f32.mrf.mxu0 }
 0x27c   :  { %v269_v53 = vadd.f32 %v1468_v48, %v268_v52 }
 0x27d   :  { %v1571_v54 = vpop.f32.mrf.mxu0 }
 0x27e   :  { %273 = vst [vmem:[#allocation2 + $0x8] sm:$0xff] %v269_v53 }
 0x27f   :  { %v352_v55 = vpop.f32.mrf.mxu0 }
 0x281   :  { %v1578_v56 = vpop.f32.mrf.mxu0  ;;  %v276_v59 = vld [vmem:[#allocation2] sm:$0x1]  ;;  %v381_v15 = vld [vmem:[#allocation2 + $0x1] sm:$0x1]  ;;  %v487_v36 = vld [vmem:[#allocation2 + $0x2] sm:$0x1] }
 0x285   :  { %v277_v57 = vld [vmem:[#allocation2 + $0x8] sm:$0x1]  ;;  %v382_v13 = vld [vmem:[#allocation2 + $0x9] sm:$0x1]  ;;  %v488_v34 = vld [vmem:[#allocation2 + $0xa] sm:$0x1] }
 0x286   :  { %v279_v58 = vrot.slane %v277_v57, 7  ;;  %v384_v14 = vrot.slane %v382_v13, 7  ;;  %v490_v35 = vrot.slane %v488_v34, 7  ;;  %v594_v57 = vld [vmem:[#allocation2 + $0xb] sm:$0x1] }
 0x288   :  { %v282_v60 = vsel %vm281_vm6, %v276_v59, %v279_v58  ;;  %v386_v16 = vsel %vm281_vm6, %v381_v15, %v384_v14  ;;  %v492_v39 = vsel %vm281_vm6, %v487_v36, %v490_v35  ;;  %v596_v58 = vrot.slane %v594_v57, 7  ;;  %v593_v59 = vld [vmem:[#allocation2 + $0x3] sm:$0x1]  ;;  %v700_v15 = vld [vmem:[#allocation2 + $0xc] sm:$0x1] }
 0x289   :  { %v356_v61 = vadd.f32 %v352_v55, %v282_v60  ;;  %v806_v36 = vld [vmem:[#allocation2 + $0xd] sm:$0x1]  ;;  %v912_v57 = vld [vmem:[#allocation2 + $0xe] sm:$0x1] }
 0x28a   :  { %v598_v60 = vsel %vm281_vm6, %v593_v59, %v596_v58  ;;  %v914_v58 = vrot.slane %v912_v57, 7  ;;  %v911_v59 = vld [vmem:[#allocation2 + $0x6] sm:$0x1] }
 0x28b   :  { %1681 = vtanh.f32 %v356_v61  ;;  %v1470_v63 = vmul.f32 -1.442695, %v356_v61 }
 0x28d   :  { %1683 = vpow2.f32 %v1470_v63 }
 0x298   :  { %v1682_v62 = vpop.eup %1681 }
 0x299   :  { %366 = vrot.lane.b32.xlu0 %v1682_v62, %s1807_s0 }
 0x29a   :  { %v1684_v0 = vpop.eup %1683 }
 0x29b   :  { %v360_v1 = vadd.f32 1.0, %v1684_v0 }
 0x29d   :  { %1685 = vrcp.f32 %v360_v1 }
 0x2aa   :  { %v1686_v2 = vpop.eup %1685 }
 0x2ab   :  { %v364_v5 = vmul.f32 0.0, %v1686_v2 }
 0x30b   :  { %v367_v3 = vpop.permute.xlu0 %366 }
 0x30c   :  { %v369_v4 = vmul.f32 %v1686_v2, %v367_v3 }
 0x30e   :  { %371 = vrot.lane.b32.xlu0 %v369_v4, %s1808_s19 }
 0x380   :  { %v372_v6 = vpop.permute.xlu0 %371 }
 0x381   :  { %v374_v7 = vadd.f32 %v372_v6, %v364_v5 }
 0x383   :  { %1687 = vtanh.f32 %v374_v7 }
 0x390   :  { %v1688_v8 = vpop.eup %1687 }
 0x391   :  { %377 = vrot.lane.b32.xlu1 %v1688_v8, %s1809_s20 }
 0x403   :  { %v378_v9 = vpop.permute.xlu1 %377 }
 0x404   :  { %v380_v10 = vmul.f32 %v1686_v2, %v378_v9 }
 0x406   :  { %388 = vrot.lane.b32.xlu1 %v380_v10, %s1810_s21 }
 0x478   :  { %v389_v12 = vpop.permute.xlu1 %388 }
 0x479   :  { %1584 = vmatmul.mubr.msk.f32.vlgmr.msra.gmra.mxu0 %vm128_vm4, %v389_v12 }
 0x47a   :  { %1594 = vmatpush3.msra.mxu0 %v1857_v37  ;;  %1597 = vmatprep.mubr.msk.f32.mxu0 %vm1806_vm3, %v1805_v11 }
 0x47b   :  { %1595 = vmatprep.subr.mxu0 %v1805_v11 }
 0x47c   :  { %1596 = vmatpush3.msra.mxu0 %v1860_v38 }
 0x47d   :  { %1607 = vmatprep.subr.mxu0 %v1805_v11 }
 0x539   :  { %v458_v17 = vpop.f32.mrf.mxu0 }
 0x53a   :  { %v462_v18 = vadd.f32 %v458_v17, %v386_v16  ;;  %v702_v16 = vrot.slane %v700_v15, 7  ;;  %v699_v17 = vld [vmem:[#allocation2 + $0x4] sm:$0x1]  ;;  %v1018_v15 = vld [vmem:[#allocation2 + $0xf] sm:$0x1] }
 0x53b   :  { %v1585_v19 = vpop.f32.mrf.mxu0 }
 0x53c   :  { %1689 = vtanh.f32 %v462_v18  ;;  %v1472_v21 = vmul.f32 -1.442695, %v462_v18  ;;  %v704_v18 = vsel %vm281_vm6, %v699_v17, %v702_v16  ;;  %v1020_v16 = vrot.slane %v1018_v15, 7  ;;  %v1017_v17 = vld [vmem:[#allocation2 + $0x7] sm:$0x1] }
 0x53e   :  { %1691 = vpow2.f32 %v1472_v21 }
 0x549   :  { %v1690_v20 = vpop.eup %1689 }
 0x54a   :  { %472 = vrot.lane.b32.xlu0 %v1690_v20, %s1807_s0 }
 0x54b   :  { %v1692_v22 = vpop.eup %1691 }
 0x54c   :  { %v466_v23 = vadd.f32 1.0, %v1692_v22 }
 0x54e   :  { %1693 = vrcp.f32 %v466_v23 }
 0x55b   :  { %v1694_v24 = vpop.eup %1693 }
 0x55c   :  { %v470_v27 = vmul.f32 %v1694_v24, %v374_v7 }
 0x5bc   :  { %v473_v25 = vpop.permute.xlu0 %472 }
 0x5bd   :  { %v475_v26 = vmul.f32 %v1694_v24, %v473_v25 }
 0x5bf   :  { %477 = vrot.lane.b32.xlu1 %v475_v26, %s1808_s19 }
 0x631   :  { %v478_v28 = vpop.permute.xlu1 %477 }
 0x632   :  { %v480_v29 = vadd.f32 %v478_v28, %v470_v27 }
 0x634   :  { %1695 = vtanh.f32 %v480_v29 }
 0x641   :  { %v1696_v30 = vpop.eup %1695 }
 0x642   :  { %483 = vrot.lane.b32.xlu0 %v1696_v30, %s1809_s20 }
 0x6b4   :  { %v484_v31 = vpop.permute.xlu0 %483 }
 0x6b5   :  { %v486_v32 = vmul.f32 %v1694_v24, %v484_v31 }
 0x6b7   :  { %494 = vrot.lane.b32.xlu1 %v486_v32, %s1810_s21 }
 0x729   :  { %v495_v33 = vpop.permute.xlu1 %494 }
 0x72a   :  { %1591 = vmatmul.mubr.msk.f32.vlgmr.msra.gmra.mxu1 %vm128_vm4, %v495_v33 }
 0x72b   :  { %1601 = vmatpush3.msra.mxu1 %v1857_v37  ;;  %1604 = vmatprep.mubr.msk.f32.mxu1 %vm1806_vm3, %v1805_v11 }
 0x72c   :  { %1602 = vmatprep.subr.mxu1 %v1805_v11 }
 0x72d   :  { %1603 = vmatpush3.msra.mxu1 %v1860_v38 }
 0x72e   :  { %1614 = vmatprep.subr.mxu1 %v1805_v11 }
 0x7ea   :  { %v564_v40 = vpop.f32.mrf.mxu1 }
 0x7eb   :  { %v568_v41 = vadd.f32 %v564_v40, %v492_v39  ;;  %v808_v39 = vrot.slane %v806_v36, 7  ;;  %v805_v40 = vld [vmem:[#allocation2 + $0x5] sm:$0x1] }
 0x7ec   :  { %v1592_v42 = vpop.f32.mrf.mxu1 }
 0x7ed   :  { %1697 = vtanh.f32 %v568_v41  ;;  %v1474_v44 = vmul.f32 -1.442695, %v568_v41  ;;  %v810_v41 = vsel %vm281_vm6, %v805_v40, %v808_v39 }
 0x7ef   :  { %1699 = vpow2.f32 %v1474_v44 }
 0x7fa   :  { %v1698_v43 = vpop.eup %1697 }
 0x7fb   :  { %578 = vrot.lane.b32.xlu0 %v1698_v43, %s1807_s0 }
 0x7fc   :  { %v1700_v45 = vpop.eup %1699 }
 0x7fd   :  { %v572_v46 = vadd.f32 1.0, %v1700_v45 }
 0x7ff   :  { %1701 = vrcp.f32 %v572_v46 }
 0x80c   :  { %v1702_v47 = vpop.eup %1701 }
 0x80d   :  { %v576_v50 = vmul.f32 %v1702_v47, %v480_v29 }
 0x86d   :  { %v579_v48 = vpop.permute.xlu0 %578 }
 0x86e   :  { %v581_v49 = vmul.f32 %v1702_v47, %v579_v48 }
 0x870   :  { %583 = vrot.lane.b32.xlu1 %v581_v49, %s1808_s19 }
 0x8e2   :  { %v584_v51 = vpop.permute.xlu1 %583 }
 0x8e3   :  { %v586_v52 = vadd.f32 %v584_v51, %v576_v50 }
 0x8e5   :  { %1703 = vtanh.f32 %v586_v52 }
 0x8f2   :  { %v1704_v53 = vpop.eup %1703 }
 0x8f3   :  { %589 = vrot.lane.b32.xlu0 %v1704_v53, %s1809_s20 }
 0x965   :  { %v590_v54 = vpop.permute.xlu0 %589 }
 0x966   :  { %v592_v55 = vmul.f32 %v1702_v47, %v590_v54 }
 0x968   :  { %600 = vrot.lane.b32.xlu1 %v592_v55, %s1810_s21 }
 0x9da   :  { %v601_v56 = vpop.permute.xlu1 %600 }
 0x9db   :  { %1598 = vmatmul.mubr.msk.f32.vlgmr.msra.gmra.mxu0 %vm128_vm4, %v601_v56 }
 0x9dc   :  { %1608 = vmatpush3.msra.mxu0 %v1857_v37  ;;  %1611 = vmatprep.mubr.msk.f32.mxu0 %vm1806_vm3, %v1805_v11 }
 0x9dd   :  { %1609 = vmatprep.subr.mxu0 %v1805_v11 }
 0x9de   :  { %1610 = vmatpush3.msra.mxu0 %v1860_v38 }
 0x9df   :  { %1621 = vmatprep.subr.mxu0 %v1805_v11 }
 0xa9b   :  { %v670_v61 = vpop.f32.mrf.mxu0 }
 0xa9c   :  { %v674_v62 = vadd.f32 %v670_v61, %v598_v60  ;;  %v916_v60 = vsel %vm281_vm6, %v911_v59, %v914_v58 }
 0xa9d   :  { %v1599_v63 = vpop.f32.mrf.mxu0 }
 0xa9e   :  { %1705 = vtanh.f32 %v674_v62  ;;  %v1476_v1 = vmul.f32 -1.442695, %v674_v62 }
 0xaa0   :  { %1707 = vpow2.f32 %v1476_v1 }
 0xaab   :  { %v1706_v0 = vpop.eup %1705 }
 0xaac   :  { %684 = vrot.lane.b32.xlu0 %v1706_v0, %s1807_s0 }
 0xaad   :  { %v1708_v2 = vpop.eup %1707 }
 0xaae   :  { %v678_v3 = vadd.f32 1.0, %v1708_v2 }
 0xab0   :  { %1709 = vrcp.f32 %v678_v3 }
 0xabd   :  { %v1710_v4 = vpop.eup %1709 }
 0xabe   :  { %v682_v7 = vmul.f32 %v1710_v4, %v586_v52 }
 0xb1e   :  { %v685_v5 = vpop.permute.xlu0 %684 }
 0xb1f   :  { %v687_v6 = vmul.f32 %v1710_v4, %v685_v5 }
 0xb21   :  { %689 = vrot.lane.b32.xlu1 %v687_v6, %s1808_s19 }
 0xb93   :  { %v690_v8 = vpop.permute.xlu1 %689 }
 0xb94   :  { %v692_v9 = vadd.f32 %v690_v8, %v682_v7 }
 0xb96   :  { %1711 = vtanh.f32 %v692_v9 }
 0xba3   :  { %v1712_v10 = vpop.eup %1711 }
 0xba4   :  { %695 = vrot.lane.b32.xlu0 %v1712_v10, %s1809_s20 }
 0xc16   :  { %v696_v12 = vpop.permute.xlu0 %695 }
 0xc17   :  { %v698_v13 = vmul.f32 %v1710_v4, %v696_v12 }
 0xc19   :  { %706 = vrot.lane.b32.xlu1 %v698_v13, %s1810_s21 }
 0xc8b   :  { %v707_v14 = vpop.permute.xlu1 %706 }
 0xc8c   :  { %1605 = vmatmul.mubr.msk.f32.vlgmr.msra.gmra.mxu1 %vm128_vm4, %v707_v14 }
 0xc8d   :  { %1615 = vmatpush3.msra.mxu1 %v1857_v37  ;;  %1618 = vmatprep.mubr.msk.f32.mxu1 %vm1806_vm3, %v1805_v11 }
 0xc8e   :  { %1616 = vmatprep.subr.mxu1 %v1805_v11 }
 0xc8f   :  { %1617 = vmatpush3.msra.mxu1 %v1860_v38 }
 0xc90   :  { %1628 = vmatprep.subr.mxu1 %v1805_v11 }
 0xd4c   :  { %v776_v19 = vpop.f32.mrf.mxu1 }
 0xd4d   :  { %v780_v20 = vadd.f32 %v776_v19, %v704_v18  ;;  %v1022_v18 = vsel %vm281_vm6, %v1017_v17, %v1020_v16 }
 0xd4e   :  { %v1606_v21 = vpop.f32.mrf.mxu1 }
 0xd4f   :  { %1713 = vtanh.f32 %v780_v20  ;;  %v1478_v23 = vmul.f32 -1.442695, %v780_v20 }
 0xd51   :  { %1715 = vpow2.f32 %v1478_v23 }
 0xd5c   :  { %v1714_v22 = vpop.eup %1713 }
 0xd5d   :  { %790 = vrot.lane.b32.xlu0 %v1714_v22, %s1807_s0 }
 0xd5e   :  { %v1716_v24 = vpop.eup %1715 }
 0xd5f   :  { %v784_v25 = vadd.f32 1.0, %v1716_v24 }
 0xd61   :  { %1717 = vrcp.f32 %v784_v25  ;;  %v1485_v25 = vmul.f32 -1.442695, %v1022_v18 }
 0xd6e   :  { %v1718_v26 = vpop.eup %1717 }
 0xd6f   :  { %v788_v29 = vmul.f32 %v1718_v26, %v692_v9 }
 0xdcf   :  { %v791_v27 = vpop.permute.xlu0 %790 }
 0xdd0   :  { %v793_v28 = vmul.f32 %v1718_v26, %v791_v27 }
 0xdd2   :  { %795 = vrot.lane.b32.xlu1 %v793_v28, %s1808_s19 }
 0xe44   :  { %v796_v30 = vpop.permute.xlu1 %795 }
 0xe45   :  { %v798_v31 = vadd.f32 %v796_v30, %v788_v29 }
 0xe47   :  { %1719 = vtanh.f32 %v798_v31 }
 0xe54   :  { %v1720_v32 = vpop.eup %1719 }
 0xe55   :  { %801 = vrot.lane.b32.xlu0 %v1720_v32, %s1809_s20 }
 0xec7   :  { %v802_v33 = vpop.permute.xlu0 %801 }
 0xec8   :  { %v804_v34 = vmul.f32 %v1718_v26, %v802_v33 }
 0xeca   :  { %812 = vrot.lane.b32.xlu1 %v804_v34, %s1810_s21 }
 0xf3c   :  { %v813_v35 = vpop.permute.xlu1 %812 }
 0xf3d   :  { %1612 = vmatmul.mubr.msk.f32.vlgmr.msra.gmra.mxu0 %vm128_vm4, %v813_v35 }
 0xf3e   :  { %1622 = vmatpush3.msra.mxu0 %v1857_v37  ;;  %1625 = vmatprep.mubr.msk.f32.mxu0 %vm1806_vm3, %v1805_v11 }
 0xf3f   :  { %1623 = vmatprep.subr.mxu0 %v1805_v11 }
 0xf40   :  { %1624 = vmatpush3.msra.mxu0 %v1860_v38 }
 0xf41   :  { %1639 = vmatprep.subr.mxu0 %v1805_v11 }
 0xffd   :  { %v882_v42 = vpop.f32.mrf.mxu0 }
 0xffe   :  { %v886_v43 = vadd.f32 %v882_v42, %v810_v41  ;;  %v1153_v42 = vld [vmem:[#allocation3 + $0x80] sm:$0xff] }
 0xfff   :  { %v1613_v44 = vpop.f32.mrf.mxu0 }
0x1000   :  { %1721 = vtanh.f32 %v886_v43  ;;  %v1480_v37 = vmul.f32 -1.442695, %v886_v43  ;;  %v1152_v43 = vld [vmem:[#allocation3 + $0x78] sm:$0xff]  ;;  %v1151_v44 = vld [vmem:[#allocation3 + $0x70] sm:$0xff] }
0x1002   :  { %1723 = vpow2.f32 %v1480_v37 }
0x100d   :  { %v1722_v45 = vpop.eup %1721 }
0x100e   :  { %896 = vrot.lane.b32.xlu0 %v1722_v45, %s1807_s0 }
0x100f   :  { %v1724_v46 = vpop.eup %1723 }
0x1010   :  { %v890_v47 = vadd.f32 1.0, %v1724_v46 }
0x1012   :  { %1725 = vrcp.f32 %v890_v47  ;;  %v1150_v47 = vld [vmem:[#allocation3 + $0x68] sm:$0xff] }
0x101f   :  { %v1726_v38 = vpop.eup %1725 }
0x1020   :  { %v894_v50 = vmul.f32 %v1726_v38, %v798_v31 }
0x1080   :  { %v897_v48 = vpop.permute.xlu0 %896 }
0x1081   :  { %v899_v49 = vmul.f32 %v1726_v38, %v897_v48 }
0x1083   :  { %901 = vrot.lane.b32.xlu1 %v899_v49, %s1808_s19 }
0x10f5   :  { %v902_v51 = vpop.permute.xlu1 %901 }
0x10f6   :  { %v904_v52 = vadd.f32 %v902_v51, %v894_v50 }
0x10f8   :  { %1727 = vtanh.f32 %v904_v52 }
0x1105   :  { %v1728_v53 = vpop.eup %1727 }
0x1106   :  { %907 = vrot.lane.b32.xlu0 %v1728_v53, %s1809_s20  ;;  %v1235_v53 = vld [vmem:[#allocation3 + $0xa0] sm:$0xff] }
0x1178   :  { %v908_v54 = vpop.permute.xlu0 %907 }
0x1179   :  { %v910_v55 = vmul.f32 %v1726_v38, %v908_v54  ;;  %v1236_v38 = vld [vmem:[#allocation3 + $0xa8] sm:$0xff]  ;;  %v1234_v54 = vld [vmem:[#allocation3 + $0x98] sm:$0xff] }
0x117b   :  { %918 = vrot.lane.b32.xlu1 %v910_v55, %s1810_s21  ;;  %v1233_v55 = vld [vmem:[#allocation3 + $0x90] sm:$0xff] }
0x11ed   :  { %v919_v56 = vpop.permute.xlu1 %918 }
0x11ee   :  { %1619 = vmatmul.mubr.msk.f32.vlgmr.msra.gmra.mxu1 %vm128_vm4, %v919_v56  ;;  %v1486_v56 = vld [vmem:[#allocation3 + $0x88] ss:$0 sm:$0xff] }
0x11ef   :  { %1636 = vmatprep.mubr.msk.f32.mxu1 %vm1806_vm3, %v1805_v11  ;;  %1629 = vmatpush3.msra.mxu1 %v1153_v42 }
0x11f0   :  { %1630 = vmatprep.subr.mxu1 %v1805_v11 }
0x11f1   :  { %1631 = vmatpush3.msra.mxu1 %v1152_v43 }
0x11f2   :  { %1632 = vmatprep.subr.mxu1 %v1805_v11 }
0x11f3   :  { %1633 = vmatpush3.msra.mxu1 %v1151_v44 }
0x11f4   :  { %1634 = vmatprep.subr.mxu1 %v1805_v11 }
0x11f5   :  { %1635 = vmatpush3.msra.mxu1 %v1150_v47 }
0x11f6   :  { %1650 = vmatprep.subr.mxu1 %v1805_v11 }
0x12ae   :  { %v988_v61 = vpop.f32.mrf.mxu1 }
0x12af   :  { %v992_v62 = vadd.f32 %v988_v61, %v916_v60  ;;  %v1359_v61 = vld [vmem:[#allocation3 + $0xd8] sm:$0xff] }
0x12b0   :  { %v1620_v63 = vpop.f32.mrf.mxu1 }
0x12b1   :  { %1729 = vtanh.f32 %v992_v62  ;;  %v1482_v1 = vmul.f32 -1.442695, %v992_v62  ;;  %v1358_v62 = vld [vmem:[#allocation3 + $0xd0] sm:$0xff] }
0x12b2   :  { %v1488_v63 = vld [vmem:[#allocation3 + $0xb0] ss:$0 sm:$0xff] }
0x12b3   :  { %1731 = vpow2.f32 %v1482_v1 }
0x12be   :  { %v1730_v0 = vpop.eup %1729 }
0x12bf   :  { %1002 = vrot.lane.b32.xlu0 %v1730_v0, %s1807_s0  ;;  %v1357_v0 = vld [vmem:[#allocation3 + $0xc8] sm:$0xff] }
0x12c0   :  { %v1732_v2 = vpop.eup %1731 }
0x12c1   :  { %v996_v3 = vadd.f32 1.0, %v1732_v2 }
0x12c3   :  { %1733 = vrcp.f32 %v996_v3 }
0x12d0   :  { %v1734_v4 = vpop.eup %1733 }
0x12d1   :  { %v1000_v7 = vmul.f32 %v1734_v4, %v904_v52 }
0x1331   :  { %v1003_v5 = vpop.permute.xlu0 %1002 }
0x1332   :  { %v1005_v6 = vmul.f32 %v1734_v4, %v1003_v5  ;;  %v1355_v5 = vld [vmem:[#allocation3 + $0xb8] sm:$0xff] }
0x1334   :  { %1007 = vrot.lane.b32.xlu1 %v1005_v6, %s1808_s19 }
0x13a6   :  { %v1008_v8 = vpop.permute.xlu1 %1007 }
0x13a7   :  { %v1010_v9 = vadd.f32 %v1008_v8, %v1000_v7 }
0x13a9   :  { %1735 = vtanh.f32 %v1010_v9 }
0x13b6   :  { %v1736_v10 = vpop.eup %1735 }
0x13b7   :  { %1013 = vrot.lane.b32.xlu0 %v1736_v10, %s1809_s20 }
0x1429   :  { %v1014_v12 = vpop.permute.xlu0 %1013 }
0x142a   :  { %v1016_v13 = vmul.f32 %v1734_v4, %v1014_v12  ;;  %v1356_v4 = vld [vmem:[#allocation3 + $0xc0] sm:$0xff] }
0x142c   :  { %1024 = vrot.lane.b32.xlu1 %v1016_v13, %s1810_s21 }
0x149e   :  { %v1025_v14 = vpop.permute.xlu1 %1024 }
0x149f   :  { %1626 = vmatmul.mubr.msk.f32.vlgmr.msra.gmra.mxu0 %vm128_vm4, %v1025_v14 }
0x14a0   :  { %1647 = vmatprep.mubr.msk.f32.mxu0 %vm1806_vm3, %v1805_v11  ;;  %1640 = vmatpush3.msra.mxu0 %v1236_v38 }
0x14a1   :  { %1641 = vmatprep.subr.mxu0 %v1805_v11 }
0x14a2   :  { %1642 = vmatpush3.msra.mxu0 %v1235_v53 }
0x14a3   :  { %1643 = vmatprep.subr.mxu0 %v1805_v11 }
0x14a4   :  { %1644 = vmatpush3.msra.mxu0 %v1234_v54 }
0x14a5   :  { %1645 = vmatprep.subr.mxu0 %v1805_v11 }
0x14a6   :  { %1646 = vmatpush3.msra.mxu0 %v1233_v55 }
0x155f   :  { %v1094_v19 = vpop.f32.mrf.mxu0 }
0x1560   :  { %v1098_v20 = vadd.f32 %v1094_v19, %v1022_v18 }
0x1561   :  { %v1627_v21 = vpop.f32.mrf.mxu0 }
0x1562   :  { %1737 = vtanh.f32 %v1098_v20  ;;  %v1484_v24 = vmul.f32 -1.442695, %v1098_v20 }
0x1563   :  { %1739 = vtanh.f32 %v1022_v18 }
0x1564   :  { %1741 = vpow2.f32 %v1484_v24 }
0x1565   :  { %1743 = vpow2.f32 %v1485_v25 }
0x156f   :  { %v1738_v22 = vpop.eup %1737 }
0x1570   :  { %1108 = vrot.lane.b32.xlu0 %v1738_v22, %s1807_s0  ;;  %v1740_v23 = vpop.eup %1739 }
0x1571   :  { %v1742_v26 = vpop.eup %1741 }
0x1572   :  { %v1102_v27 = vadd.f32 1.0, %v1742_v26  ;;  %v1744_v28 = vpop.eup %1743 }
0x1573   :  { %v1126_v29 = vadd.f32 1.0, %v1744_v28 }
0x1574   :  { %1131 = vrot.lane.b32.xlu0 %v1740_v23, %s1807_s0  ;;  %1745 = vrcp.f32 %v1102_v27 }
0x1575   :  { %1747 = vrcp.f32 %v1126_v29 }
0x1581   :  { %v1746_v30 = vpop.eup %1745 }
0x1582   :  { %v1748_v33 = vpop.eup %1747  ;;  %v1106_v39 = vmul.f32 %v1746_v30, %v1010_v9 }
0x15e2   :  { %v1109_v31 = vpop.permute.xlu0 %1108 }
0x15e3   :  { %v1111_v32 = vmul.f32 %v1746_v30, %v1109_v31 }
0x15e5   :  { %1113 = vrot.lane.b32.xlu1 %v1111_v32, %s1808_s19 }
0x15e6   :  { %v1132_v34 = vpop.permute.xlu0 %1131 }
0x15e7   :  { %v1134_v35 = vmul.f32 %v1748_v33, %v1132_v34 }
0x15e9   :  { %1749 = vtanh.f32 %v1134_v35 }
0x15f6   :  { %v1750_v36 = vpop.eup %1749 }
0x15f7   :  { %1137 = vrot.lane.b32.xlu0 %v1750_v36, %s1811_s22 }
0x1657   :  { %v1114_v40 = vpop.permute.xlu1 %1113 }
0x1658   :  { %v1116_v41 = vadd.f32 %v1114_v40, %v1106_v39 }
0x165a   :  { %1751 = vtanh.f32 %v1116_v41 }
0x1667   :  { %v1752_v45 = vpop.eup %1751 }
0x1668   :  { %1119 = vrot.lane.b32.xlu1 %v1752_v45, %s1809_s20 }
0x1669   :  { %v1138_v37 = vpop.permute.xlu0 %1137 }
0x166a   :  { %v1140_v46 = vmul.f32 %v1748_v33, %v1138_v37 }
0x166c   :  { %1146 = vrot.lane.b32.xlu0 %v1140_v46, %s1809_s20 }
0x16da   :  { %v1120_v48 = vpop.permute.xlu1 %1119 }
0x16db   :  { %v1122_v49 = vmul.f32 %v1746_v30, %v1120_v48 }
0x16dd   :  { %1142 = vrot.lane.b32.xlu1 %v1122_v49, %s1810_s21 }
0x16de   :  { %v1147_v50 = vpop.permute.xlu0 %1146 }
0x174f   :  { %v1143_v51 = vpop.permute.xlu1 %1142 }
0x1750   :  { %v1149_v52 = vsel %vm128_vm4, %v1143_v51, %v1147_v50 }
0x1751   :  { %1637 = vmatmul.mubr.msk.f32.vlgmr.msra.gmra.mxu1 %vm227_vm5, %v1149_v52 }
0x1752   :  { %1660 = vmatprep.mubr.msk.f32.mxu1 %vm1806_vm3, %v1805_v11  ;;  %1651 = vmatpush3.msra.mxu1 %v1359_v61 }
0x1753   :  { %1652 = vmatprep.subr.mxu1 %v1805_v11 }
0x1754   :  { %1653 = vmatpush3.msra.mxu1 %v1358_v62 }
0x1755   :  { %1654 = vmatprep.subr.mxu1 %v1805_v11 }
0x1756   :  { %1655 = vmatpush3.msra.mxu1 %v1357_v0 }
0x1757   :  { %1656 = vmatprep.subr.mxu1 %v1805_v11 }
0x1758   :  { %1657 = vmatpush3.msra.mxu1 %v1356_v4 }
0x1759   :  { %1658 = vmatprep.subr.mxu1 %v1805_v11 }
0x175a   :  { %1659 = vmatpush3.msra.mxu1 %v1355_v5 }
0x1811   :  { %v1228_v57 = vpop.f32.mrf.mxu1 }
0x1812   :  { %v1229_v58 = vadd.f32 %v1486_v56, %v1228_v57 }
0x1813   :  { %v1638_v59 = vpop.f32.mrf.mxu1 }
0x1814   :  { %v1232_v60 = vmax.f32 %v1229_v58, 0.0 }
0x1816   :  { %1648 = vmatmul.mubr.msk.f32.vlgmr.msra.gmra.mxu0 %vm227_vm5, %v1232_v60 }
0x18d6   :  { %v1311_v1 = vpop.f32.mrf.mxu0 }
0x18d7   :  { %v1312_v2 = vadd.f32 %v1488_v63, %v1311_v1 }
0x18d8   :  { %v1649_v3 = vpop.f32.mrf.mxu0 }
0x18d9   :  { %1344 = vrot.lane.b32.xlu0 %v1312_v2, %s1812_s23  ;;  %1331 = vrot.lane.b32.xlu1 %v1312_v2, %s1813_s24  ;;  %v1315_v10 = vmul.f32 %v1312_v2, %v1312_v2 }
0x18dd   :  { %1340 = vrot.lane.b32.xlu1 %v1312_v2, %s1814_s25 }
0x194b   :  { %v1345_v6 = vpop.permute.xlu0 %1344  ;;  %v1332_v7 = vpop.permute.xlu1 %1331 }
0x194c   :  { %v1347_v8 = vmul.f32 %v1345_v6, %v1312_v2  ;;  %v1334_v9 = vmul.f32 %v1332_v7, %v1312_v2 }
0x194e   :  { %1349 = vrot.lane.b32.xlu1 %v1347_v8, %s1815_s26  ;;  %1336 = vrot.lane.b32.xlu0 %v1334_v9, %s1814_s25 }
0x194f   :  { %v1341_v12 = vpop.permute.xlu1 %1340 }
0x1950   :  { %v1343_v13 = vmul.f32 %v1341_v12, %v1312_v2 }
0x1952   :  { %1317 = vrot.lane.b32.xlu0 %v1315_v10, %s1814_s25 }
0x19c0   :  { %v1337_v14 = vpop.permute.xlu0 %1336  ;;  %v1350_v15 = vpop.permute.xlu1 %1349 }
0x19c1   :  { %v1339_v16 = vadd.f32 %v1337_v14, %v1334_v9  ;;  %v1352_v17 = vsub.f32 %v1343_v13, %v1350_v15 }
0x19c3   :  { %v1354_v18 = vsel %vm1353_vm7, %v1339_v16, %v1352_v17 }
0x19c4   :  { %1661 = vmatmul.mubr.msk.f32.vlgmr.msra.gmra.mxu1 %vm1360_vm8, %v1354_v18  ;;  %v1318_v11 = vpop.permute.xlu0 %1317 }
0x19c5   :  { %v1320_v19 = vadd.f32 %v1318_v11, %v1315_v10 }
0x19c7   :  { %1322 = vrot.lane.b32.xlu1 %v1320_v19, %s1813_s24 }
0x1a39   :  { %v1323_v20 = vpop.permute.xlu1 %1322 }
0x1a3a   :  { %v1326_v21 = vsel %vm1325_vm9, %v1323_v20, 0.0 }
0x1a3b   :  { %1327 = vadd.xlane.f32.xlu0 %v1326_v21 }
0x1a84   :  { %v1430_v22 = vpop.f32.mrf.mxu1 }
0x1a86   :  { %v1662_v23 = vpop.f32.mrf.mxu1 }
0x1ac4   :  { %v1328_v24 = vpop.xlane.xlu0 %1327 }
0x1ac5   :  { %v1329_v25 = vmul.f32 0.25, %v1328_v24 }
0x1ac7   :  { %v1434_v26 = vadd.f32 1e-08, %v1329_v25 }
0x1ac9   :  { %1753 = vrcp.f32 %v1434_v26 }
0x1ad6   :  { %v1754_v27 = vpop.eup %1753 }
0x1ad7   :  { %v1436_v28 = vmul.f32 %v1754_v27, %v1430_v22 }
0x1ad9   :  { %v1437_v29 = vadd.f32 0.5, %v1436_v28 }
0x1adb   :  { %v1438_v30 = vmax.f32 %v1437_v29, 0.0 }
0x1add   :  { %v1439_v31 = vadd.f32 1e-05, %v1438_v30 }
0x1adf   :  { %1755 = vlog2.f32 %v1439_v31 }
0x1aec   :  { %v1756_v32 = vpop.eup %1755 }
0x1aed   :  { %v1441_v33 = vmul.f32 0.6931472, %v1756_v32 }
0x1aef   :  { %1443 = vst.msk [vmem:[#allocation6] sm:$0x3] %vm1442_vm10, %v1441_v33 }
0x1af0   :  { %1788 = shalt.err (!%p1785_p9)
}
0x1af1   :  { %1453 = dma.vmem_to_hbm [thread:$0]  %s1451_s28, 32, %s1983_s2, [#allocation5]  }
0x1af2   :  { %1799 = dma.done.wait [#allocation5], 32  }
0x1af3   :  { %1800 = vsyncadd [#allocation5], 4294967264 }
0x1af4   :  { %1457 = vsyncpa [#allocation4], 1 }
0x1af5   :  { %1458 = vsyncpa [#allocation5], 1 }

</bundles_post_ra>
